<compile_context>
chip_gen: v7x
topology: tpu7x:2x2x1
jax: 0.10.0
libtpu: 0.0.40
codegen_flags: <defaults>
</compile_context>

<pallas_src>
import math
import functools

import jax
import jax.numpy as jnp
from jax import lax
from jax.experimental import pallas as pl
from jax.experimental.pallas import tpu as pltpu


def _pick_tile(n, target):
    """Largest tile <= target that divides n (multiples of 8), else full n."""
    if n <= target:
        return n
    for t in (1024, 512, 384, 256, 128, 64, 32, 16, 8):
        if t <= target and n % t == 0:
            return t
    return n


# ---------------------------------------------------------------------------
# Fused/stacked linear kernel: y[p] = x[p] @ W[p] + b[p]
#   xs: (P, M, Din) bf16, ws: (P, Din, Dout) bf16, bs: (P, 1, Dout) f32 -> (P, M, Dout)
# One pallas_call covers all P projections (Q/K/V in one launch) and tiles M.
# Operands arrive pre-cast to bf16 (no per-step VALU cast); accumulation + bias in f32.
# ---------------------------------------------------------------------------
def _linear_kernel(x_ref, w_ref, b_ref, o_ref):
    y = jnp.dot(x_ref[0], w_ref[0], preferred_element_type=jnp.float32) + b_ref[0]
    o_ref[0] = y.astype(o_ref.dtype)


def fused_linear(xs, ws, bs, *, out_dtype, tm=512):
    P, M, Din = xs.shape
    Dout = ws.shape[-1]
    tm_eff = _pick_tile(M, tm)

    return pl.pallas_call(
        _linear_kernel,
        out_shape=jax.ShapeDtypeStruct((P, M, Dout), out_dtype),
        grid_spec=pltpu.PrefetchScalarGridSpec(
            num_scalar_prefetch=0,
            grid=(P, M // tm_eff),
            in_specs=[
                pl.BlockSpec((1, tm_eff, Din), lambda p, m: (p, m, 0)),
                pl.BlockSpec((1, Din, Dout), lambda p, m: (p, 0, 0)),
                pl.BlockSpec((1, 1, Dout), lambda p, m: (p, 0, 0)),
            ],
            out_specs=pl.BlockSpec((1, tm_eff, Dout), lambda p, m: (p, m, 0)),
        ),
        compiler_params=pltpu.CompilerParams(
            dimension_semantics=("parallel", "parallel"),
            vmem_limit_bytes=64 * 1024 * 1024),
    )(xs, ws, bs.reshape(P, 1, Dout))


# ---------------------------------------------------------------------------
# Flash-style multi-head attention kernel.
# Grid = (batch, q-tile, k-tile); the k-tile axis is the reduction axis (output block
# index is constant across it -> accumulator resident in VMEM).  All heads of one
# (q-tile, k-tile) pair are processed per step; per-head running max / sum live in
# small VMEM scratch, per-head outputs accumulate into a (tq, D) f32 scratch at their
# lane slice, and the final result is one lane-dense (tq, D) store.
# ---------------------------------------------------------------------------
def _mha_flash_kernel(klen_ref, qlen_ref, q_ref, k_ref, v_ref, o_ref,
                      m_sc, l_sc, acc_sc, *, n_head, tk):
    b = pl.program_id(0)
    qi = pl.program_id(1)
    ki = pl.program_id(2)
    nk_steps = pl.num_programs(2)

    @pl.when(ki == 0)
    def _():
        m_sc[...] = jnp.full_like(m_sc, -jnp.inf)
        l_sc[...] = jnp.zeros_like(l_sc)
        acc_sc[...] = jnp.zeros_like(acc_sc)

    klen = klen_ref[b]

    q = q_ref[0]  # (tq, D) bf16; 1/sqrt(d_k) already folded into the Q projection
    k = k_ref[0]  # (tk, D) bf16
    v = v_ref[0]  # (tk, D) bf16
    tq, D = q.shape
    d_k = D // n_head

    # Key-padding mask as an additive bias, computed once per step, shared by heads.
    col = ki * tk + lax.broadcasted_iota(jnp.int32, (1, tk), 1)
    bias = jnp.where(col < klen, 0.0, -1e30)  # (1, tk) f32

    for h in range(n_head):  # static, unrolled over heads
        sl = slice(h * d_k, (h + 1) * d_k)
        s = lax.dot_general(q[:, sl], k[:, sl], (((1,), (1,)), ((), ())),
                            preferred_element_type=jnp.float32)        # (tq, tk) f32
        s = s + bias

        m_prev = m_sc[h]                                               # (tq, 1)
        m_new = jnp.maximum(m_prev, jnp.max(s, axis=-1, keepdims=True))
        alpha = jnp.exp(m_prev - m_new)
        p = jnp.exp(s - m_new)
        l_sc[h] = alpha * l_sc[h] + jnp.sum(p, axis=-1, keepdims=True)
        acc_sc[:, sl] = alpha * acc_sc[:, sl] + jnp.dot(
            p.astype(jnp.bfloat16), v[:, sl], preferred_element_type=jnp.float32)
        m_sc[h] = m_new

    @pl.when(ki == nk_steps - 1)
    def _():
        qlen = qlen_ref[b]
        for h in range(n_head):
            sl = slice(h * d_k, (h + 1) * d_k)
            acc_sc[:, sl] = acc_sc[:, sl] * pl.reciprocal(l_sc[h], approx=True)
        # Zero padded query rows; also zero rows if this batch element has no valid keys.
        row = qi * tq + lax.broadcasted_iota(jnp.int32, (tq, 1), 0)
        valid = (row < qlen) & (klen > 0)
        o_ref[0] = jnp.where(valid, acc_sc[...], 0.0).astype(o_ref.dtype)


# ---------------------------------------------------------------------------
# Full module forward
# ---------------------------------------------------------------------------
def pallas_multihead_attention(queries, keys, values, key_lens, query_lens,
                               params, n_head):
    B, nq, D = queries.shape
    nk = keys.shape[1]
    d_k = D // n_head
    scale = 1.0 / math.sqrt(d_k)

    # Fold the 1/sqrt(d_k) attention scale into the Q projection (free).
    wq = params["Wq"] * scale
    bq = params["bq"] * scale

    def project(inputs, weights, biases):
        # Cast to bf16 at the boundary (fused with the stack) -> halves DMA bytes.
        xs = jnp.stack([x.reshape(-1, D) for x in inputs]).astype(jnp.bfloat16)
        ws = jnp.stack(weights).astype(jnp.bfloat16)
        bs = jnp.stack(biases).astype(jnp.float32)
        ys = fused_linear(xs, ws, bs, out_dtype=jnp.bfloat16)
        return [ys[i].reshape(x.shape) for i, x in enumerate(inputs)]

    if nq == nk:
        # Single launch for Q, K and V projections.
        Q, K, V = project([queries, keys, values],
                          [wq, params["Wk"], params["Wv"]],
                          [bq, params["bk"], params["bv"]])
    else:
        # Cross-attention with different seq lengths: Q alone, K/V fused.
        (Q,) = project([queries], [wq], [bq])
        K, V = project([keys, values],
                       [params["Wk"], params["Wv"]],
                       [params["bk"], params["bv"]])

    klens = key_lens.astype(jnp.int32)
    qlens = query_lens.astype(jnp.int32)

    tq = _pick_tile(nq, 256)
    tk = _pick_tile(nk, 512)

    cost = pl.CostEstimate(
        flops=4 * B * n_head * nq * nk * d_k,                    # QK^T + PV
        transcendentals=B * n_head * nq * nk,                    # exp
        bytes_accessed=2 * (Q.size + K.size + V.size + B * nq * D),  # bf16 -> 2 B/elem
    )

    mh = pl.pallas_call(
        functools.partial(_mha_flash_kernel, n_head=n_head, tk=tk),
        out_shape=jax.ShapeDtypeStruct((B, nq, D), jnp.bfloat16),
        grid_spec=pltpu.PrefetchScalarGridSpec(
            num_scalar_prefetch=2,
            grid=(B, nq // tq, nk // tk),
            in_specs=[
                pl.BlockSpec((1, tq, D), lambda b, qi, ki, kl, ql: (b, qi, 0)),
                pl.BlockSpec((1, tk, D), lambda b, qi, ki, kl, ql: (b, ki, 0)),
                pl.BlockSpec((1, tk, D), lambda b, qi, ki, kl, ql: (b, ki, 0)),
            ],
            out_specs=pl.BlockSpec((1, tq, D), lambda b, qi, ki, kl, ql: (b, qi, 0)),
            scratch_shapes=[
                pltpu.VMEM((n_head, tq, 1), jnp.float32),   # running max per head
                pltpu.VMEM((n_head, tq, 1), jnp.float32),   # running sum per head
                pltpu.VMEM((tq, D), jnp.float32),           # lane-dense output accum
            ],
        ),
        compiler_params=pltpu.CompilerParams(
            dimension_semantics=("parallel", "parallel", "arbitrary"),
            vmem_limit_bytes=64 * 1024 * 1024),
        cost_estimate=cost,
    )(klens, qlens, Q, K, V)

    # Output projection: mh is already (B, nq, D) lane-dense -> no split/concat needed.
    out = fused_linear(mh.reshape(1, B * nq, D),
                       params["Wo"][None].astype(jnp.bfloat16),
                       params["bo"][None].astype(jnp.float32),
                       out_dtype=jnp.float32)
    return out.reshape(B, nq, D)


# ---------------------------------------------------------------------------
if __name__ == "__main__":
    key = jax.random.PRNGKey(0)
    B, nq, nk = 2, 8, 8
    input_size, n_head = 32, 4

    ks = jax.random.split(key, 11)
    bound = 1.0 / math.sqrt(input_size)  # PyTorch nn.Linear default init

    def u(k, shape):
        return jax.random.uniform(k, shape, jnp.float32, -bound, bound)

    params = {
        "Wq": u(ks[0], (input_size, input_size)), "bq": u(ks[1], (input_size,)),
        "Wk": u(ks[2], (input_size, input_size)), "bk": u(ks[3], (input_size,)),
        "Wv": u(ks[4], (input_size, input_size)), "bv": u(ks[5], (input_size,)),
        "Wo": u(ks[6], (input_size, input_size)), "bo": u(ks[7], (input_size,)),
    }

    queries = jax.random.normal(ks[8],  (B, nq, input_size), jnp.float32)
    keys_in = jax.random.normal(ks[9],  (B, nk, input_size), jnp.float32)
    values  = jax.random.normal(ks[10], (B, nk, input_size), jnp.float32)
    key_lens   = jnp.array([8, 5], jnp.int32)
    query_lens = jnp.array([8, 6], jnp.int32)

    fwd = jax.jit(functools.partial(pallas_multihead_attention, n_head=n_head))
    out = fwd(queries, keys_in, values, key_lens, query_lens, params)
    out = jax.block_until_ready(out)
    assert out.shape == (B, nq, input_size)
    assert bool(jnp.all(jnp.isfinite(out)))
    print("KERNEL_OK")
</pallas_src>

<mosaic_0001>
module attributes {stable_mosaic.version = 11 : i64} {
  func.func @_linear_kernel(%arg0: i32, %arg1: i32, %arg2: memref<1x16x32xbf16, #tpu.memory_space<vmem>>, %arg3: memref<1x32x32xbf16, #tpu.memory_space<vmem>>, %arg4: memref<1x1x32xf32, #tpu.memory_space<vmem>>, %arg5: memref<1x16x32xf32, #tpu.memory_space<vmem>>) attributes {dimension_semantics = [#tpu.dimension_semantics<parallel>, #tpu.dimension_semantics<parallel>], iteration_bounds = array<i64: 1, 1>, scalar_prefetch = 0 : i64, scratch_operands = 0 : i64, tpu.core_type = #tpu.core_type<tc>, window_params = [{transform_indices = @transform_0, window_bounds = array<i64: 1, 16, 32>}, {transform_indices = @transform_1, window_bounds = array<i64: 1, 32, 32>}, {transform_indices = @transform_2, window_bounds = array<i64: 1, 1, 32>}, {transform_indices = @transform_3, window_bounds = array<i64: 1, 16, 32>}]} {
    %c0 = arith.constant 0 : index
    %c0_0 = arith.constant 0 : index
    %c0_1 = arith.constant 0 : index
    %0 = vector.load %arg2[%c0, %c0_0, %c0_1] : memref<1x16x32xbf16, #tpu.memory_space<vmem>>, vector<1x16x32xbf16>
    %1 = vector.shape_cast %0 : vector<1x16x32xbf16> to vector<16x32xbf16>
    %c0_2 = arith.constant 0 : index
    %c0_3 = arith.constant 0 : index
    %c0_4 = arith.constant 0 : index
    %2 = vector.load %arg3[%c0_2, %c0_3, %c0_4] : memref<1x32x32xbf16, #tpu.memory_space<vmem>>, vector<1x32x32xbf16>
    %3 = vector.shape_cast %2 : vector<1x32x32xbf16> to vector<32x32xbf16>
    %cst = arith.constant dense<0.000000e+00> : vector<16x32xf32>
    %4 = tpu.matmul %1, %3, %cst {dimension_numbers = #tpu.dot_dimension_numbers<[1], [0], [0], [1], [0, 0, 1, 1], [], []>} : vector<16x32xbf16>, vector<32x32xbf16>, vector<16x32xf32> -> vector<16x32xf32>
    %c0_5 = arith.constant 0 : index
    %c0_6 = arith.constant 0 : index
    %c0_7 = arith.constant 0 : index
    %5 = vector.load %arg4[%c0_5, %c0_6, %c0_7] : memref<1x1x32xf32, #tpu.memory_space<vmem>>, vector<1x1x32xf32>
    %6 = vector.shape_cast %5 : vector<1x1x32xf32> to vector<1x32xf32>
    %7 = vector.broadcast %6 : vector<1x32xf32> to vector<16x32xf32>
    %8 = arith.addf %4, %7 : vector<16x32xf32>
    %c0_8 = arith.constant 0 : index
    %c0_9 = arith.constant 0 : index
    %c0_10 = arith.constant 0 : index
    %9 = vector.load %arg5[%c0_8, %c0_9, %c0_10] : memref<1x16x32xf32, #tpu.memory_space<vmem>>, vector<1x16x32xf32>
    %10 = vector.shape_cast %9 : vector<1x16x32xf32> to vector<16x32xf32>
    %11 = vector.shape_cast %8 : vector<16x32xf32> to vector<1x16x32xf32>
    tpu.vector_store %arg5[%c0_8, %c0_9, %c0_10], %11 {strides = array<i32>} : memref<1x16x32xf32, #tpu.memory_space<vmem>>, vector<1x16x32xf32>,
    return
  }
  func.func @transform_0(%arg0: i32, %arg1: i32) -> (i32, i32, i32) {
    %c0_i32 = arith.constant 0 : i32
    %c0_i32_0 = arith.constant 0 : i32
    return %arg0, %arg1, %c0_i32 : i32, i32, i32
  }
  func.func @transform_1(%arg0: i32, %arg1: i32) -> (i32, i32, i32) {
    %c0_i32 = arith.constant 0 : i32
    %c0_i32_0 = arith.constant 0 : i32
    %c0_i32_1 = arith.constant 0 : i32
    return %arg0, %c0_i32, %c0_i32_0 : i32, i32, i32
  }
  func.func @transform_2(%arg0: i32, %arg1: i32) -> (i32, i32, i32) {
    %c0_i32 = arith.constant 0 : i32
    %c0_i32_0 = arith.constant 0 : i32
    %c0_i32_1 = arith.constant 0 : i32
    return %arg0, %c0_i32, %c0_i32_0 : i32, i32, i32
  }
  func.func @transform_3(%arg0: i32, %arg1: i32) -> (i32, i32, i32) {
    %c0_i32 = arith.constant 0 : i32
    %c0_i32_0 = arith.constant 0 : i32
    return %arg0, %arg1, %c0_i32 : i32, i32, i32
  }
}

module attributes {stable_mosaic.version = 11 : i64} {
  func.func @_linear_kernel(%arg0: i32, %arg1: i32, %arg2: memref<1x16x32xbf16, #tpu.memory_space<vmem>>, %arg3: memref<1x32x32xbf16, #tpu.memory_space<vmem>>, %arg4: memref<1x1x32xf32, #tpu.memory_space<vmem>>, %arg5: memref<1x16x32xbf16, #tpu.memory_space<vmem>>) attributes {dimension_semantics = [#tpu.dimension_semantics<parallel>, #tpu.dimension_semantics<parallel>], iteration_bounds = array<i64: 3, 1>, scalar_prefetch = 0 : i64, scratch_operands = 0 : i64, tpu.core_type = #tpu.core_type<tc>, window_params = [{transform_indices = @transform_0, window_bounds = array<i64: 1, 16, 32>}, {transform_indices = @transform_1, window_bounds = array<i64: 1, 32, 32>}, {transform_indices = @transform_2, window_bounds = array<i64: 1, 1, 32>}, {transform_indices = @transform_3, window_bounds = array<i64: 1, 16, 32>}]} {
    %c0 = arith.constant 0 : index
    %c0_0 = arith.constant 0 : index
    %c0_1 = arith.constant 0 : index
    %0 = vector.load %arg2[%c0, %c0_0, %c0_1] : memref<1x16x32xbf16, #tpu.memory_space<vmem>>, vector<1x16x32xbf16>
    %1 = vector.shape_cast %0 : vector<1x16x32xbf16> to vector<16x32xbf16>
    %c0_2 = arith.constant 0 : index
    %c0_3 = arith.constant 0 : index
    %c0_4 = arith.constant 0 : index
    %2 = vector.load %arg3[%c0_2, %c0_3, %c0_4] : memref<1x32x32xbf16, #tpu.memory_space<vmem>>, vector<1x32x32xbf16>
    %3 = vector.shape_cast %2 : vector<1x32x32xbf16> to vector<32x32xbf16>
    %cst = arith.constant dense<0.000000e+00> : vector<16x32xf32>
    %4 = tpu.matmul %1, %3, %cst {dimension_numbers = #tpu.dot_dimension_numbers<[1], [0], [0], [1], [0, 0, 1, 1], [], []>} : vector<16x32xbf16>, vector<32x32xbf16>, vector<16x32xf32> -> vector<16x32xf32>
    %c0_5 = arith.constant 0 : index
    %c0_6 = arith.constant 0 : index
    %c0_7 = arith.constant 0 : index
    %5 = vector.load %arg4[%c0_5, %c0_6, %c0_7] : memref<1x1x32xf32, #tpu.memory_space<vmem>>, vector<1x1x32xf32>
    %6 = vector.shape_cast %5 : vector<1x1x32xf32> to vector<1x32xf32>
    %7 = vector.broadcast %6 : vector<1x32xf32> to vector<16x32xf32>
    %8 = arith.addf %4, %7 : vector<16x32xf32>
    %9 = arith.truncf %8 : vector<16x32xf32> to vector<16x32xbf16>
    %c0_8 = arith.constant 0 : index
    %c0_9 = arith.constant 0 : index
    %c0_10 = arith.constant 0 : index
    %10 = vector.load %arg5[%c0_8, %c0_9, %c0_10] : memref<1x16x32xbf16, #tpu.memory_space<vmem>>, vector<1x16x32xbf16>
    %11 = vector.shape_cast %10 : vector<1x16x32xbf16> to vector<16x32xbf16>
    %12 = vector.shape_cast %9 : vector<16x32xbf16> to vector<1x16x32xbf16>
    tpu.vector_store %arg5[%c0_8, %c0_9, %c0_10], %12 {strides = array<i32>} : memref<1x16x32xbf16, #tpu.memory_space<vmem>>, vector<1x16x32xbf16>,
    return
  }
  func.func @transform_0(%arg0: i32, %arg1: i32) -> (i32, i32, i32) {
    %c0_i32 = arith.constant 0 : i32
    %c0_i32_0 = arith.constant 0 : i32
    return %arg0, %arg1, %c0_i32 : i32, i32, i32
  }
  func.func @transform_1(%arg0: i32, %arg1: i32) -> (i32, i32, i32) {
    %c0_i32 = arith.constant 0 : i32
    %c0_i32_0 = arith.constant 0 : i32
    %c0_i32_1 = arith.constant 0 : i32
    return %arg0, %c0_i32, %c0_i32_0 : i32, i32, i32
  }
  func.func @transform_2(%arg0: i32, %arg1: i32) -> (i32, i32, i32) {
    %c0_i32 = arith.constant 0 : i32
    %c0_i32_0 = arith.constant 0 : i32
    %c0_i32_1 = arith.constant 0 : i32
    return %arg0, %c0_i32, %c0_i32_0 : i32, i32, i32
  }
  func.func @transform_3(%arg0: i32, %arg1: i32) -> (i32, i32, i32) {
    %c0_i32 = arith.constant 0 : i32
    %c0_i32_0 = arith.constant 0 : i32
    return %arg0, %arg1, %c0_i32 : i32, i32, i32
  }
}

module attributes {stable_mosaic.version = 11 : i64} {
  func.func @_mha_flash_kernel(%arg0: i32, %arg1: i32, %arg2: i32, %arg3: memref<2xi32, #tpu.memory_space<smem>>, %arg4: memref<2xi32, #tpu.memory_space<smem>>, %arg5: memref<1x8x32xbf16, #tpu.memory_space<vmem>>, %arg6: memref<1x8x32xbf16, #tpu.memory_space<vmem>>, %arg7: memref<1x8x32xbf16, #tpu.memory_space<vmem>>, %arg8: memref<1x8x32xbf16, #tpu.memory_space<vmem>>, %arg9: memref<4x8x1xf32, #tpu.memory_space<vmem>>, %arg10: memref<4x8x1xf32, #tpu.memory_space<vmem>>, %arg11: memref<8x32xf32, #tpu.memory_space<vmem>>) attributes {dimension_semantics = [#tpu.dimension_semantics<parallel>, #tpu.dimension_semantics<parallel>, #tpu.dimension_semantics<arbitrary>], iteration_bounds = array<i64: 2, 1, 1>, scalar_prefetch = 2 : i64, scratch_operands = 3 : i64, tpu.core_type = #tpu.core_type<tc>, window_params = [{transform_indices = @transform_0, window_bounds = array<i64: 1, 8, 32>}, {transform_indices = @transform_1, window_bounds = array<i64: 1, 8, 32>}, {transform_indices = @transform_2, window_bounds = array<i64: 1, 8, 32>}, {transform_indices = @transform_3, window_bounds = array<i64: 1, 8, 32>}]} {
    %c0_i32 = arith.constant 0 : i32
    %0 = arith.cmpi eq, %arg2, %c0_i32 : i32
    %1 = arith.extui %0 : i1 to i32
    %c0_i32_0 = arith.constant 0 : i32
    %2 = arith.cmpi ne, %1, %c0_i32_0 : i32
    scf.if %2 {
      %cst_86 = arith.constant 0xFF800000 : f32
      %163 = vector.broadcast %cst_86 : f32 to vector<4x8x1xf32>
      %c0_87 = arith.constant 0 : index
      %c0_88 = arith.constant 0 : index
      %c0_89 = arith.constant 0 : index
      %164 = vector.load %arg9[%c0_87, %c0_88, %c0_89] : memref<4x8x1xf32, #tpu.memory_space<vmem>>, vector<4x8x1xf32>
      tpu.vector_store %arg9[%c0_87, %c0_88, %c0_89], %163 {strides = array<i32>} : memref<4x8x1xf32, #tpu.memory_space<vmem>>, vector<4x8x1xf32>,
      %cst_90 = arith.constant 0.000000e+00 : f32
      %165 = vector.broadcast %cst_90 : f32 to vector<4x8x1xf32>
      %c0_91 = arith.constant 0 : index
      %c0_92 = arith.constant 0 : index
      %c0_93 = arith.constant 0 : index
      %166 = vector.load %arg10[%c0_91, %c0_92, %c0_93] : memref<4x8x1xf32, #tpu.memory_space<vmem>>, vector<4x8x1xf32>
      tpu.vector_store %arg10[%c0_91, %c0_92, %c0_93], %165 {strides = array<i32>} : memref<4x8x1xf32, #tpu.memory_space<vmem>>, vector<4x8x1xf32>,
      %cst_94 = arith.constant 0.000000e+00 : f32
      %167 = vector.broadcast %cst_94 : f32 to vector<8x32xf32>
      %c0_95 = arith.constant 0 : index
      %c0_96 = arith.constant 0 : index
      %168 = vector.load %arg11[%c0_95, %c0_96] : memref<8x32xf32, #tpu.memory_space<vmem>>, vector<8x32xf32>
      tpu.vector_store %arg11[%c0_95, %c0_96], %167 {strides = array<i32>} : memref<8x32xf32, #tpu.memory_space<vmem>>, vector<8x32xf32>,
    } else {
    }
    %3 = arith.index_cast %arg0 : i32 to index
    %4 = memref.load %arg3[%3] : memref<2xi32, #tpu.memory_space<smem>>
    %c0 = arith.constant 0 : index
    %c0_1 = arith.constant 0 : index
    %c0_2 = arith.constant 0 : index
    %5 = vector.load %arg5[%c0, %c0_1, %c0_2] : memref<1x8x32xbf16, #tpu.memory_space<vmem>>, vector<1x8x32xbf16>
    %6 = vector.shape_cast %5 : vector<1x8x32xbf16> to vector<8x32xbf16>
    %c0_3 = arith.constant 0 : index
    %c0_4 = arith.constant 0 : index
    %c0_5 = arith.constant 0 : index
    %7 = vector.load %arg6[%c0_3, %c0_4, %c0_5] : memref<1x8x32xbf16, #tpu.memory_space<vmem>>, vector<1x8x32xbf16>
    %8 = vector.shape_cast %7 : vector<1x8x32xbf16> to vector<8x32xbf16>
    %c0_6 = arith.constant 0 : index
    %c0_7 = arith.constant 0 : index
    %c0_8 = arith.constant 0 : index
    %9 = vector.load %arg7[%c0_6, %c0_7, %c0_8] : memref<1x8x32xbf16, #tpu.memory_space<vmem>>, vector<1x8x32xbf16>
    %10 = vector.shape_cast %9 : vector<1x8x32xbf16> to vector<8x32xbf16>
    %c8_i32 = arith.constant 8 : i32
    %11 = arith.muli %arg2, %c8_i32 : i32
    %12 = tpu.iota {dimensions = array<i32: 1>} : vector<1x8xi32>
    %13 = vector.broadcast %11 : i32 to vector<1x8xi32>
    %14 = arith.addi %13, %12 : vector<1x8xi32>
    %15 = vector.broadcast %4 : i32 to vector<1x8xi32>
    %16 = arith.cmpi slt, %14, %15 : vector<1x8xi32>
    %cst = arith.constant 0.000000e+00 : f32
    %cst_9 = arith.constant -1.000000e+30 : f32
    %17 = vector.broadcast %cst : f32 to vector<1x8xf32>
    %18 = vector.broadcast %cst_9 : f32 to vector<1x8xf32>
    %19 = arith.select %16, %17, %18 : vector<1x8xi1>, vector<1x8xf32>
    %20 = vector.extract_strided_slice %6 {offsets = [0, 0], sizes = [8, 8], strides = [1, 1]} : vector<8x32xbf16> to vector<8x8xbf16>
    %21 = vector.extract_strided_slice %8 {offsets = [0, 0], sizes = [8, 8], strides = [1, 1]} : vector<8x32xbf16> to vector<8x8xbf16>
    %cst_10 = arith.constant dense<0.000000e+00> : vector<8x8xf32>
    %22 = tpu.matmul %20, %21, %cst_10 {dimension_numbers = #tpu.dot_dimension_numbers<[1], [1], [0], [0], [0, 0, 1, 0], [], []>} : vector<8x8xbf16>, vector<8x8xbf16>, vector<8x8xf32> -> vector<8x8xf32>
    %23 = vector.broadcast %19 : vector<1x8xf32> to vector<8x8xf32>
    %24 = arith.addf %22, %23 : vector<8x8xf32>
    %c0_11 = arith.constant 0 : index
    %c0_12 = arith.constant 0 : index
    %c0_13 = arith.constant 0 : index
    %25 = vector.load %arg9[%c0_11, %c0_12, %c0_13] : memref<4x8x1xf32, #tpu.memory_space<vmem>>, vector<1x8x1xf32>
    %26 = vector.shape_cast %25 : vector<1x8x1xf32> to vector<8x1xf32>
    %cst_14 = arith.constant dense<0xFF800000> : vector<8xf32>
    %27 = vector.multi_reduction <maximumf>, %24, %cst_14 [1] : vector<8x8xf32> to vector<8xf32>
    %28 = vector.shape_cast %27 : vector<8xf32> to vector<8x1xf32>
    %29 = arith.maximumf %26, %28 : vector<8x1xf32>
    %30 = arith.subf %26, %29 : vector<8x1xf32>
    %31 = math.exp %30 : vector<8x1xf32>
    %32 = vector.broadcast %29 : vector<8x1xf32> to vector<8x8xf32>
    %33 = arith.subf %24, %32 : vector<8x8xf32>
    %34 = math.exp %33 : vector<8x8xf32>
    %c0_15 = arith.constant 0 : index
    %c0_16 = arith.constant 0 : index
    %c0_17 = arith.constant 0 : index
    %35 = vector.load %arg10[%c0_15, %c0_16, %c0_17] : memref<4x8x1xf32, #tpu.memory_space<vmem>>, vector<1x8x1xf32>
    %36 = vector.shape_cast %35 : vector<1x8x1xf32> to vector<8x1xf32>
    %37 = arith.mulf %31, %36 : vector<8x1xf32>
    %cst_18 = arith.constant dense<0.000000e+00> : vector<8xf32>
    %38 = vector.multi_reduction <add>, %34, %cst_18 [1] : vector<8x8xf32> to vector<8xf32>
    %39 = vector.shape_cast %38 : vector<8xf32> to vector<8x1xf32>
    %40 = arith.addf %37, %39 : vector<8x1xf32>
    %c0_19 = arith.constant 0 : index
    %c0_20 = arith.constant 0 : index
    %c0_21 = arith.constant 0 : index
    %41 = vector.load %arg10[%c0_19, %c0_20, %c0_21] : memref<4x8x1xf32, #tpu.memory_space<vmem>>, vector<1x8x1xf32>
    %42 = vector.shape_cast %41 : vector<1x8x1xf32> to vector<8x1xf32>
    %43 = vector.shape_cast %40 : vector<8x1xf32> to vector<1x8x1xf32>
    tpu.vector_store %arg10[%c0_19, %c0_20, %c0_21], %43 {strides = array<i32>} : memref<4x8x1xf32, #tpu.memory_space<vmem>>, vector<1x8x1xf32>,
    %c0_22 = arith.constant 0 : index
    %c0_23 = arith.constant 0 : index
    %44 = vector.load %arg11[%c0_22, %c0_23] : memref<8x32xf32, #tpu.memory_space<vmem>>, vector<8x8xf32>
    %45 = vector.broadcast %31 : vector<8x1xf32> to vector<8x8xf32>
    %46 = arith.mulf %45, %44 : vector<8x8xf32>
    %47 = arith.truncf %34 : vector<8x8xf32> to vector<8x8xbf16>
    %48 = vector.extract_strided_slice %10 {offsets = [0, 0], sizes = [8, 8], strides = [1, 1]} : vector<8x32xbf16> to vector<8x8xbf16>
    %cst_24 = arith.constant dense<0.000000e+00> : vector<8x8xf32>
    %49 = tpu.matmul %47, %48, %cst_24 {dimension_numbers = #tpu.dot_dimension_numbers<[1], [0], [0], [1], [0, 0, 1, 1], [], []>} : vector<8x8xbf16>, vector<8x8xbf16>, vector<8x8xf32> -> vector<8x8xf32>
    %50 = arith.addf %46, %49 : vector<8x8xf32>
    %c0_25 = arith.constant 0 : index
    %c0_26 = arith.constant 0 : index
    %51 = vector.load %arg11[%c0_25, %c0_26] : memref<8x32xf32, #tpu.memory_space<vmem>>, vector<8x8xf32>
    tpu.vector_store %arg11[%c0_25, %c0_26], %50 {strides = array<i32>} : memref<8x32xf32, #tpu.memory_space<vmem>>, vector<8x8xf32>,
    %c0_27 = arith.constant 0 : index
    %c0_28 = arith.constant 0 : index
    %c0_29 = arith.constant 0 : index
    %52 = vector.load %arg9[%c0_27, %c0_28, %c0_29] : memref<4x8x1xf32, #tpu.memory_space<vmem>>, vector<1x8x1xf32>
    %53 = vector.shape_cast %52 : vector<1x8x1xf32> to vector<8x1xf32>
    %54 = vector.shape_cast %29 : vector<8x1xf32> to vector<1x8x1xf32>
    tpu.vector_store %arg9[%c0_27, %c0_28, %c0_29], %54 {strides = array<i32>} : memref<4x8x1xf32, #tpu.memory_space<vmem>>, vector<1x8x1xf32>,
    %55 = vector.extract_strided_slice %6 {offsets = [0, 8], sizes = [8, 8], strides = [1, 1]} : vector<8x32xbf16> to vector<8x8xbf16>
    %56 = vector.extract_strided_slice %8 {offsets = [0, 8], sizes = [8, 8], strides = [1, 1]} : vector<8x32xbf16> to vector<8x8xbf16>
    %cst_30 = arith.constant dense<0.000000e+00> : vector<8x8xf32>
    %57 = tpu.matmul %55, %56, %cst_30 {dimension_numbers = #tpu.dot_dimension_numbers<[1], [1], [0], [0], [0, 0, 1, 0], [], []>} : vector<8x8xbf16>, vector<8x8xbf16>, vector<8x8xf32> -> vector<8x8xf32>
    %58 = vector.broadcast %19 : vector<1x8xf32> to vector<8x8xf32>
    %59 = arith.addf %57, %58 : vector<8x8xf32>
    %c1 = arith.constant 1 : index
    %c0_31 = arith.constant 0 : index
    %c0_32 = arith.constant 0 : index
    %60 = vector.load %arg9[%c1, %c0_31, %c0_32] : memref<4x8x1xf32, #tpu.memory_space<vmem>>, vector<1x8x1xf32>
    %61 = vector.shape_cast %60 : vector<1x8x1xf32> to vector<8x1xf32>
    %cst_33 = arith.constant dense<0xFF800000> : vector<8xf32>
    %62 = vector.multi_reduction <maximumf>, %59, %cst_33 [1] : vector<8x8xf32> to vector<8xf32>
    %63 = vector.shape_cast %62 : vector<8xf32> to vector<8x1xf32>
    %64 = arith.maximumf %61, %63 : vector<8x1xf32>
    %65 = arith.subf %61, %64 : vector<8x1xf32>
    %66 = math.exp %65 : vector<8x1xf32>
    %67 = vector.broadcast %64 : vector<8x1xf32> to vector<8x8xf32>
    %68 = arith.subf %59, %67 : vector<8x8xf32>
    %69 = math.exp %68 : vector<8x8xf32>
    %c1_34 = arith.constant 1 : index
    %c0_35 = arith.constant 0 : index
    %c0_36 = arith.constant 0 : index
    %70 = vector.load %arg10[%c1_34, %c0_35, %c0_36] : memref<4x8x1xf32, #tpu.memory_space<vmem>>, vector<1x8x1xf32>
    %71 = vector.shape_cast %70 : vector<1x8x1xf32> to vector<8x1xf32>
    %72 = arith.mulf %66, %71 : vector<8x1xf32>
    %cst_37 = arith.constant dense<0.000000e+00> : vector<8xf32>
    %73 = vector.multi_reduction <add>, %69, %cst_37 [1] : vector<8x8xf32> to vector<8xf32>
    %74 = vector.shape_cast %73 : vector<8xf32> to vector<8x1xf32>
    %75 = arith.addf %72, %74 : vector<8x1xf32>
    %c1_38 = arith.constant 1 : index
    %c0_39 = arith.constant 0 : index
    %c0_40 = arith.constant 0 : index
    %76 = vector.load %arg10[%c1_38, %c0_39, %c0_40] : memref<4x8x1xf32, #tpu.memory_space<vmem>>, vector<1x8x1xf32>
    %77 = vector.shape_cast %76 : vector<1x8x1xf32> to vector<8x1xf32>
    %78 = vector.shape_cast %75 : vector<8x1xf32> to vector<1x8x1xf32>
    tpu.vector_store %arg10[%c1_38, %c0_39, %c0_40], %78 {strides = array<i32>} : memref<4x8x1xf32, #tpu.memory_space<vmem>>, vector<1x8x1xf32>,
    %c0_41 = arith.constant 0 : index
    %c8 = arith.constant 8 : index
    %79 = vector.load %arg11[%c0_41, %c8] : memref<8x32xf32, #tpu.memory_space<vmem>>, vector<8x8xf32>
    %80 = vector.broadcast %66 : vector<8x1xf32> to vector<8x8xf32>
    %81 = arith.mulf %80, %79 : vector<8x8xf32>
    %82 = arith.truncf %69 : vector<8x8xf32> to vector<8x8xbf16>
    %83 = vector.extract_strided_slice %10 {offsets = [0, 8], sizes = [8, 8], strides = [1, 1]} : vector<8x32xbf16> to vector<8x8xbf16>
    %cst_42 = arith.constant dense<0.000000e+00> : vector<8x8xf32>
    %84 = tpu.matmul %82, %83, %cst_42 {dimension_numbers = #tpu.dot_dimension_numbers<[1], [0], [0], [1], [0, 0, 1, 1], [], []>} : vector<8x8xbf16>, vector<8x8xbf16>, vector<8x8xf32> -> vector<8x8xf32>
    %85 = arith.addf %81, %84 : vector<8x8xf32>
    %c0_43 = arith.constant 0 : index
    %c8_44 = arith.constant 8 : index
    %86 = vector.load %arg11[%c0_43, %c8_44] : memref<8x32xf32, #tpu.memory_space<vmem>>, vector<8x8xf32>
    tpu.vector_store %arg11[%c0_43, %c8_44], %85 {strides = array<i32>} : memref<8x32xf32, #tpu.memory_space<vmem>>, vector<8x8xf32>,
    %c1_45 = arith.constant 1 : index
    %c0_46 = arith.constant 0 : index
    %c0_47 = arith.constant 0 : index
    %87 = vector.load %arg9[%c1_45, %c0_46, %c0_47] : memref<4x8x1xf32, #tpu.memory_space<vmem>>, vector<1x8x1xf32>
    %88 = vector.shape_cast %87 : vector<1x8x1xf32> to vector<8x1xf32>
    %89 = vector.shape_cast %64 : vector<8x1xf32> to vector<1x8x1xf32>
    tpu.vector_store %arg9[%c1_45, %c0_46, %c0_47], %89 {strides = array<i32>} : memref<4x8x1xf32, #tpu.memory_space<vmem>>, vector<1x8x1xf32>,
    %90 = vector.extract_strided_slice %6 {offsets = [0, 16], sizes = [8, 8], strides = [1, 1]} : vector<8x32xbf16> to vector<8x8xbf16>
    %91 = vector.extract_strided_slice %8 {offsets = [0, 16], sizes = [8, 8], strides = [1, 1]} : vector<8x32xbf16> to vector<8x8xbf16>
    %cst_48 = arith.constant dense<0.000000e+00> : vector<8x8xf32>
    %92 = tpu.matmul %90, %91, %cst_48 {dimension_numbers = #tpu.dot_dimension_numbers<[1], [1], [0], [0], [0, 0, 1, 0], [], []>} : vector<8x8xbf16>, vector<8x8xbf16>, vector<8x8xf32> -> vector<8x8xf32>
    %93 = vector.broadcast %19 : vector<1x8xf32> to vector<8x8xf32>
    %94 = arith.addf %92, %93 : vector<8x8xf32>
    %c2 = arith.constant 2 : index
    %c0_49 = arith.constant 0 : index
    %c0_50 = arith.constant 0 : index
    %95 = vector.load %arg9[%c2, %c0_49, %c0_50] : memref<4x8x1xf32, #tpu.memory_space<vmem>>, vector<1x8x1xf32>
    %96 = vector.shape_cast %95 : vector<1x8x1xf32> to vector<8x1xf32>
    %cst_51 = arith.constant dense<0xFF800000> : vector<8xf32>
    %97 = vector.multi_reduction <maximumf>, %94, %cst_51 [1] : vector<8x8xf32> to vector<8xf32>
    %98 = vector.shape_cast %97 : vector<8xf32> to vector<8x1xf32>
    %99 = arith.maximumf %96, %98 : vector<8x1xf32>
    %100 = arith.subf %96, %99 : vector<8x1xf32>
    %101 = math.exp %100 : vector<8x1xf32>
    %102 = vector.broadcast %99 : vector<8x1xf32> to vector<8x8xf32>
    %103 = arith.subf %94, %102 : vector<8x8xf32>
    %104 = math.exp %103 : vector<8x8xf32>
    %c2_52 = arith.constant 2 : index
    %c0_53 = arith.constant 0 : index
    %c0_54 = arith.constant 0 : index
    %105 = vector.load %arg10[%c2_52, %c0_53, %c0_54] : memref<4x8x1xf32, #tpu.memory_space<vmem>>, vector<1x8x1xf32>
    %106 = vector.shape_cast %105 : vector<1x8x1xf32> to vector<8x1xf32>
    %107 = arith.mulf %101, %106 : vector<8x1xf32>
    %cst_55 = arith.constant dense<0.000000e+00> : vector<8xf32>
    %108 = vector.multi_reduction <add>, %104, %cst_55 [1] : vector<8x8xf32> to vector<8xf32>
    %109 = vector.shape_cast %108 : vector<8xf32> to vector<8x1xf32>
    %110 = arith.addf %107, %109 : vector<8x1xf32>
    %c2_56 = arith.constant 2 : index
    %c0_57 = arith.constant 0 : index
    %c0_58 = arith.constant 0 : index
    %111 = vector.load %arg10[%c2_56, %c0_57, %c0_58] : memref<4x8x1xf32, #tpu.memory_space<vmem>>, vector<1x8x1xf32>
    %112 = vector.shape_cast %111 : vector<1x8x1xf32> to vector<8x1xf32>
    %113 = vector.shape_cast %110 : vector<8x1xf32> to vector<1x8x1xf32>
    tpu.vector_store %arg10[%c2_56, %c0_57, %c0_58], %113 {strides = array<i32>} : memref<4x8x1xf32, #tpu.memory_space<vmem>>, vector<1x8x1xf32>,
    %c0_59 = arith.constant 0 : index
    %c16 = arith.constant 16 : index
    %114 = vector.load %arg11[%c0_59, %c16] : memref<8x32xf32, #tpu.memory_space<vmem>>, vector<8x8xf32>
    %115 = vector.broadcast %101 : vector<8x1xf32> to vector<8x8xf32>
    %116 = arith.mulf %115, %114 : vector<8x8xf32>
    %117 = arith.truncf %104 : vector<8x8xf32> to vector<8x8xbf16>
    %118 = vector.extract_strided_slice %10 {offsets = [0, 16], sizes = [8, 8], strides = [1, 1]} : vector<8x32xbf16> to vector<8x8xbf16>
    %cst_60 = arith.constant dense<0.000000e+00> : vector<8x8xf32>
    %119 = tpu.matmul %117, %118, %cst_60 {dimension_numbers = #tpu.dot_dimension_numbers<[1], [0], [0], [1], [0, 0, 1, 1], [], []>} : vector<8x8xbf16>, vector<8x8xbf16>, vector<8x8xf32> -> vector<8x8xf32>
    %120 = arith.addf %116, %119 : vector<8x8xf32>
    %c0_61 = arith.constant 0 : index
    %c16_62 = arith.constant 16 : index
    %121 = vector.load %arg11[%c0_61, %c16_62] : memref<8x32xf32, #tpu.memory_space<vmem>>, vector<8x8xf32>
    tpu.vector_store %arg11[%c0_61, %c16_62], %120 {strides = array<i32>} : memref<8x32xf32, #tpu.memory_space<vmem>>, vector<8x8xf32>,
    %c2_63 = arith.constant 2 : index
    %c0_64 = arith.constant 0 : index
    %c0_65 = arith.constant 0 : index
    %122 = vector.load %arg9[%c2_63, %c0_64, %c0_65] : memref<4x8x1xf32, #tpu.memory_space<vmem>>, vector<1x8x1xf32>
    %123 = vector.shape_cast %122 : vector<1x8x1xf32> to vector<8x1xf32>
    %124 = vector.shape_cast %99 : vector<8x1xf32> to vector<1x8x1xf32>
    tpu.vector_store %arg9[%c2_63, %c0_64, %c0_65], %124 {strides = array<i32>} : memref<4x8x1xf32, #tpu.memory_space<vmem>>, vector<1x8x1xf32>,
    %125 = vector.extract_strided_slice %6 {offsets = [0, 24], sizes = [8, 8], strides = [1, 1]} : vector<8x32xbf16> to vector<8x8xbf16>
    %126 = vector.extract_strided_slice %8 {offsets = [0, 24], sizes = [8, 8], strides = [1, 1]} : vector<8x32xbf16> to vector<8x8xbf16>
    %cst_66 = arith.constant dense<0.000000e+00> : vector<8x8xf32>
    %127 = tpu.matmul %125, %126, %cst_66 {dimension_numbers = #tpu.dot_dimension_numbers<[1], [1], [0], [0], [0, 0, 1, 0], [], []>} : vector<8x8xbf16>, vector<8x8xbf16>, vector<8x8xf32> -> vector<8x8xf32>
    %128 = vector.broadcast %19 : vector<1x8xf32> to vector<8x8xf32>
    %129 = arith.addf %127, %128 : vector<8x8xf32>
    %c3 = arith.constant 3 : index
    %c0_67 = arith.constant 0 : index
    %c0_68 = arith.constant 0 : index
    %130 = vector.load %arg9[%c3, %c0_67, %c0_68] : memref<4x8x1xf32, #tpu.memory_space<vmem>>, vector<1x8x1xf32>
    %131 = vector.shape_cast %130 : vector<1x8x1xf32> to vector<8x1xf32>
    %cst_69 = arith.constant dense<0xFF800000> : vector<8xf32>
    %132 = vector.multi_reduction <maximumf>, %129, %cst_69 [1] : vector<8x8xf32> to vector<8xf32>
    %133 = vector.shape_cast %132 : vector<8xf32> to vector<8x1xf32>
    %134 = arith.maximumf %131, %133 : vector<8x1xf32>
    %135 = arith.subf %131, %134 : vector<8x1xf32>
    %136 = math.exp %135 : vector<8x1xf32>
    %137 = vector.broadcast %134 : vector<8x1xf32> to vector<8x8xf32>
    %138 = arith.subf %129, %137 : vector<8x8xf32>
    %139 = math.exp %138 : vector<8x8xf32>
    %c3_70 = arith.constant 3 : index
    %c0_71 = arith.constant 0 : index
    %c0_72 = arith.constant 0 : index
    %140 = vector.load %arg10[%c3_70, %c0_71, %c0_72] : memref<4x8x1xf32, #tpu.memory_space<vmem>>, vector<1x8x1xf32>
    %141 = vector.shape_cast %140 : vector<1x8x1xf32> to vector<8x1xf32>
    %142 = arith.mulf %136, %141 : vector<8x1xf32>
    %cst_73 = arith.constant dense<0.000000e+00> : vector<8xf32>
    %143 = vector.multi_reduction <add>, %139, %cst_73 [1] : vector<8x8xf32> to vector<8xf32>
    %144 = vector.shape_cast %143 : vector<8xf32> to vector<8x1xf32>
    %145 = arith.addf %142, %144 : vector<8x1xf32>
    %c3_74 = arith.constant 3 : index
    %c0_75 = arith.constant 0 : index
    %c0_76 = arith.constant 0 : index
    %146 = vector.load %arg10[%c3_74, %c0_75, %c0_76] : memref<4x8x1xf32, #tpu.memory_space<vmem>>, vector<1x8x1xf32>
    %147 = vector.shape_cast %146 : vector<1x8x1xf32> to vector<8x1xf32>
    %148 = vector.shape_cast %145 : vector<8x1xf32> to vector<1x8x1xf32>
    tpu.vector_store %arg10[%c3_74, %c0_75, %c0_76], %148 {strides = array<i32>} : memref<4x8x1xf32, #tpu.memory_space<vmem>>, vector<1x8x1xf32>,
    %c0_77 = arith.constant 0 : index
    %c24 = arith.constant 24 : index
    %149 = vector.load %arg11[%c0_77, %c24] : memref<8x32xf32, #tpu.memory_space<vmem>>, vector<8x8xf32>
    %150 = vector.broadcast %136 : vector<8x1xf32> to vector<8x8xf32>
    %151 = arith.mulf %150, %149 : vector<8x8xf32>
    %152 = arith.truncf %139 : vector<8x8xf32> to vector<8x8xbf16>
    %153 = vector.extract_strided_slice %10 {offsets = [0, 24], sizes = [8, 8], strides = [1, 1]} : vector<8x32xbf16> to vector<8x8xbf16>
    %cst_78 = arith.constant dense<0.000000e+00> : vector<8x8xf32>
    %154 = tpu.matmul %152, %153, %cst_78 {dimension_numbers = #tpu.dot_dimension_numbers<[1], [0], [0], [1], [0, 0, 1, 1], [], []>} : vector<8x8xbf16>, vector<8x8xbf16>, vector<8x8xf32> -> vector<8x8xf32>
    %155 = arith.addf %151, %154 : vector<8x8xf32>
    %c0_79 = arith.constant 0 : index
    %c24_80 = arith.constant 24 : index
    %156 = vector.load %arg11[%c0_79, %c24_80] : memref<8x32xf32, #tpu.memory_space<vmem>>, vector<8x8xf32>
    tpu.vector_store %arg11[%c0_79, %c24_80], %155 {strides = array<i32>} : memref<8x32xf32, #tpu.memory_space<vmem>>, vector<8x8xf32>,
    %c3_81 = arith.constant 3 : index
    %c0_82 = arith.constant 0 : index
    %c0_83 = arith.constant 0 : index
    %157 = vector.load %arg9[%c3_81, %c0_82, %c0_83] : memref<4x8x1xf32, #tpu.memory_space<vmem>>, vector<1x8x1xf32>
    %158 = vector.shape_cast %157 : vector<1x8x1xf32> to vector<8x1xf32>
    %159 = vector.shape_cast %134 : vector<8x1xf32> to vector<1x8x1xf32>
    tpu.vector_store %arg9[%c3_81, %c0_82, %c0_83], %159 {strides = array<i32>} : memref<4x8x1xf32, #tpu.memory_space<vmem>>, vector<1x8x1xf32>,
    %c0_i32_84 = arith.constant 0 : i32
    %160 = arith.cmpi eq, %arg2, %c0_i32_84 : i32
    %161 = arith.extui %160 : i1 to i32
    %c0_i32_85 = arith.constant 0 : i32
    %162 = arith.cmpi ne, %161, %c0_i32_85 : i32
    scf.if %162 {
      %163 = arith.index_cast %arg0 : i32 to index
      %164 = memref.load %arg4[%163] : memref<2xi32, #tpu.memory_space<smem>>
      %c0_86 = arith.constant 0 : index
      %c0_87 = arith.constant 0 : index
      %165 = vector.load %arg11[%c0_86, %c0_87] : memref<8x32xf32, #tpu.memory_space<vmem>>, vector<8x8xf32>
      %c0_88 = arith.constant 0 : index
      %c0_89 = arith.constant 0 : index
      %c0_90 = arith.constant 0 : index
      %166 = vector.load %arg10[%c0_88, %c0_89, %c0_90] : memref<4x8x1xf32, #tpu.memory_space<vmem>>, vector<1x8x1xf32>
      %167 = vector.shape_cast %166 : vector<1x8x1xf32> to vector<8x1xf32>
      %168 = tpu.reciprocal %167 {approx = true} : vector<8x1xf32> -> vector<8x1xf32>
      %169 = vector.broadcast %168 : vector<8x1xf32> to vector<8x8xf32>
      %170 = arith.mulf %165, %169 : vector<8x8xf32>
      %c0_91 = arith.constant 0 : index
      %c0_92 = arith.constant 0 : index
      %171 = vector.load %arg11[%c0_91, %c0_92] : memref<8x32xf32, #tpu.memory_space<vmem>>, vector<8x8xf32>
      tpu.vector_store %arg11[%c0_91, %c0_92], %170 {strides = array<i32>} : memref<8x32xf32, #tpu.memory_space<vmem>>, vector<8x8xf32>,
      %c0_93 = arith.constant 0 : index
      %c8_94 = arith.constant 8 : index
      %172 = vector.load %arg11[%c0_93, %c8_94] : memref<8x32xf32, #tpu.memory_space<vmem>>, vector<8x8xf32>
      %c1_95 = arith.constant 1 : index
      %c0_96 = arith.constant 0 : index
      %c0_97 = arith.constant 0 : index
      %173 = vector.load %arg10[%c1_95, %c0_96, %c0_97] : memref<4x8x1xf32, #tpu.memory_space<vmem>>, vector<1x8x1xf32>
      %174 = vector.shape_cast %173 : vector<1x8x1xf32> to vector<8x1xf32>
      %175 = tpu.reciprocal %174 {approx = true} : vector<8x1xf32> -> vector<8x1xf32>
      %176 = vector.broadcast %175 : vector<8x1xf32> to vector<8x8xf32>
      %177 = arith.mulf %172, %176 : vector<8x8xf32>
      %c0_98 = arith.constant 0 : index
      %c8_99 = arith.constant 8 : index
      %178 = vector.load %arg11[%c0_98, %c8_99] : memref<8x32xf32, #tpu.memory_space<vmem>>, vector<8x8xf32>
      tpu.vector_store %arg11[%c0_98, %c8_99], %177 {strides = array<i32>} : memref<8x32xf32, #tpu.memory_space<vmem>>, vector<8x8xf32>,
      %c0_100 = arith.constant 0 : index
      %c16_101 = arith.constant 16 : index
      %179 = vector.load %arg11[%c0_100, %c16_101] : memref<8x32xf32, #tpu.memory_space<vmem>>, vector<8x8xf32>
      %c2_102 = arith.constant 2 : index
      %c0_103 = arith.constant 0 : index
      %c0_104 = arith.constant 0 : index
      %180 = vector.load %arg10[%c2_102, %c0_103, %c0_104] : memref<4x8x1xf32, #tpu.memory_space<vmem>>, vector<1x8x1xf32>
      %181 = vector.shape_cast %180 : vector<1x8x1xf32> to vector<8x1xf32>
      %182 = tpu.reciprocal %181 {approx = true} : vector<8x1xf32> -> vector<8x1xf32>
      %183 = vector.broadcast %182 : vector<8x1xf32> to vector<8x8xf32>
      %184 = arith.mulf %179, %183 : vector<8x8xf32>
      %c0_105 = arith.constant 0 : index
      %c16_106 = arith.constant 16 : index
      %185 = vector.load %arg11[%c0_105, %c16_106] : memref<8x32xf32, #tpu.memory_space<vmem>>, vector<8x8xf32>
      tpu.vector_store %arg11[%c0_105, %c16_106], %184 {strides = array<i32>} : memref<8x32xf32, #tpu.memory_space<vmem>>, vector<8x8xf32>,
      %c0_107 = arith.constant 0 : index
      %c24_108 = arith.constant 24 : index
      %186 = vector.load %arg11[%c0_107, %c24_108] : memref<8x32xf32, #tpu.memory_space<vmem>>, vector<8x8xf32>
      %c3_109 = arith.constant 3 : index
      %c0_110 = arith.constant 0 : index
      %c0_111 = arith.constant 0 : index
      %187 = vector.load %arg10[%c3_109, %c0_110, %c0_111] : memref<4x8x1xf32, #tpu.memory_space<vmem>>, vector<1x8x1xf32>
      %188 = vector.shape_cast %187 : vector<1x8x1xf32> to vector<8x1xf32>
      %189 = tpu.reciprocal %188 {approx = true} : vector<8x1xf32> -> vector<8x1xf32>
      %190 = vector.broadcast %189 : vector<8x1xf32> to vector<8x8xf32>
      %191 = arith.mulf %186, %190 : vector<8x8xf32>
      %c0_112 = arith.constant 0 : index
      %c24_113 = arith.constant 24 : index
      %192 = vector.load %arg11[%c0_112, %c24_113] : memref<8x32xf32, #tpu.memory_space<vmem>>, vector<8x8xf32>
      tpu.vector_store %arg11[%c0_112, %c24_113], %191 {strides = array<i32>} : memref<8x32xf32, #tpu.memory_space<vmem>>, vector<8x8xf32>,
      %c8_i32_114 = arith.constant 8 : i32
      %193 = arith.muli %arg1, %c8_i32_114 : i32
      %194 = tpu.iota {dimensions = array<i32: 0>} : vector<8x1xi32>
      %195 = vector.broadcast %193 : i32 to vector<8x1xi32>
      %196 = arith.addi %195, %194 : vector<8x1xi32>
      %197 = vector.broadcast %164 : i32 to vector<8x1xi32>
      %198 = arith.cmpi slt, %196, %197 : vector<8x1xi32>
      %c0_i32_115 = arith.constant 0 : i32
      %199 = arith.cmpi sgt, %4, %c0_i32_115 : i32
      %200 = vector.broadcast %199 : i1 to vector<8x1xi1>
      %201 = arith.andi %198, %200 : vector<8x1xi1>
      %c0_116 = arith.constant 0 : index
      %c0_117 = arith.constant 0 : index
      %202 = vector.load %arg11[%c0_116, %c0_117] : memref<8x32xf32, #tpu.memory_space<vmem>>, vector<8x32xf32>
      %cst_118 = arith.constant 0.000000e+00 : f32
      %203 = vector.shape_cast %201 : vector<8x1xi1> to vector<8x1xi1>
      %204 = vector.broadcast %203 : vector<8x1xi1> to vector<8x32xi1>
      %205 = vector.broadcast %cst_118 : f32 to vector<8x32xf32>
      %206 = arith.select %204, %202, %205 : vector<8x32xi1>, vector<8x32xf32>
      %207 = arith.truncf %206 : vector<8x32xf32> to vector<8x32xbf16>
      %c0_119 = arith.constant 0 : index
      %c0_120 = arith.constant 0 : index
      %c0_121 = arith.constant 0 : index
      %208 = vector.load %arg8[%c0_119, %c0_120, %c0_121] : memref<1x8x32xbf16, #tpu.memory_space<vmem>>, vector<1x8x32xbf16>
      %209 = vector.shape_cast %208 : vector<1x8x32xbf16> to vector<8x32xbf16>
      %210 = vector.shape_cast %207 : vector<8x32xbf16> to vector<1x8x32xbf16>
      tpu.vector_store %arg8[%c0_119, %c0_120, %c0_121], %210 {strides = array<i32>} : memref<1x8x32xbf16, #tpu.memory_space<vmem>>, vector<1x8x32xbf16>,
    } else {
    }
    return
  }
  func.func @transform_0(%arg0: i32, %arg1: i32, %arg2: i32, %arg3: memref<2xi32, #tpu.memory_space<smem>>, %arg4: memref<2xi32, #tpu.memory_space<smem>>) -> (i32, i32, i32) {
    %c0_i32 = arith.constant 0 : i32
    %c0_i32_0 = arith.constant 0 : i32
    return %arg0, %arg1, %c0_i32 : i32, i32, i32
  }
  func.func @transform_1(%arg0: i32, %arg1: i32, %arg2: i32, %arg3: memref<2xi32, #tpu.memory_space<smem>>, %arg4: memref<2xi32, #tpu.memory_space<smem>>) -> (i32, i32, i32) {
    %c0_i32 = arith.constant 0 : i32
    %c0_i32_0 = arith.constant 0 : i32
    return %arg0, %arg2, %c0_i32 : i32, i32, i32
  }
  func.func @transform_2(%arg0: i32, %arg1: i32, %arg2: i32, %arg3: memref<2xi32, #tpu.memory_space<smem>>, %arg4: memref<2xi32, #tpu.memory_space<smem>>) -> (i32, i32, i32) {
    %c0_i32 = arith.constant 0 : i32
    %c0_i32_0 = arith.constant 0 : i32
    return %arg0, %arg2, %c0_i32 : i32, i32, i32
  }
  func.func @transform_3(%arg0: i32, %arg1: i32, %arg2: i32, %arg3: memref<2xi32, #tpu.memory_space<smem>>, %arg4: memref<2xi32, #tpu.memory_space<smem>>) -> (i32, i32, i32) {
    %c0_i32 = arith.constant 0 : i32
    %c0_i32_0 = arith.constant 0 : i32
    return %arg0, %arg1, %c0_i32 : i32, i32, i32
  }
}

</mosaic_0001>

<bundles_post_ra>
// kernel: pallas_multihead_attention.3
= control target key start
LH: loop header
LB: loop body
LE: loop exit
PB: predicated region body
PF: predicated region fallthrough
CT: control target
= control target key end

     0   :  { %s1096_s0 = inlined_call_operand.hbm [shape: bf16[3,16,32], index: 0, kind: input, shape index: {}]   ;;  %s1097_s1 = inlined_call_operand.hbm [shape: bf16[3,32,32], index: 1, kind: input, shape index: {}]   ;;  %s1098_s2 = inlined_call_operand.hbm [shape: f32[3,1,32], index: 2, kind: input, shape index: {}]   ;;  %s1099_s3 = inlined_call_operand.hbm [shape: bf16[3,16,32], index: 3, kind: output, shape index: {}]  }
   0x1   :  { %1106 = sst [smem:[#allocation13_spill]] %s1096_s0 }
   0x2   :  { %1107 = sst [smem:[#allocation14_spill]] %s1097_s1 }
   0x3   :  { %8 = vsyncpa [#allocation3], 0 }
   0x4   :  { %10 = vsyncpa [#allocation3 + $0x1], 0 }
   0x5   :  { %11 = vsyncpa [#allocation6], 0 }
   0x6   :  { %13 = vsyncpa [#allocation6 + $0x1], 0 }
   0x7   :  { %14 = vsyncpa [#allocation4], 0 }
   0x8   :  { %16 = vsyncpa [#allocation4 + $0x1], 0  ;;  %s842_s12 = smov 0   ;;  %s844_s13 = smov 0  }
   0x9   :  { %s846_s14 = smov 0   ;;  %s848_s15 = smov 0  }
   0xa   :  { %s850_s16 = smov 0   ;;  %s852_s17 = smov 0  }
   0xb LB: > { %s873_s18 = sadd.s32 4294967295, %s810_s17   ;;  %s511_s19 = sadd.s32 4294967294, %s810_s17   ;;  %s810_s17 = sphi %s852_s17, %s22_s17   ;;  %s806_s16 = sphi %s850_s16, %s1129_s16   ;;  %s802_s15 = sphi %s848_s15, %s1128_s15   ;;  %s798_s14 = sphi %s846_s14, %s1127_s14   ;;  %s794_s13 = sphi %s844_s13, %s1126_s13   ;;  %s790_s12 = sphi %s842_s12, %s1125_s12  }
   0xc   : > { %s34_s20 = sadd.s32 1, %s806_s16  ;;  %s43_s21 = sadd.s32 1, %s798_s14 }
   0xd   : > { %p36_p0 = scmp.ge.s32.totalorder %s34_s20, 3  ;;  %p50_p1 = scmp.ne.s32.totalorder %s798_s14, %s794_s13 }
   0xe   : > { %p51_p2 = scmp.eq.s32.totalorder %s810_s17, 0  ;;  %p56_p3 = scmp.ne.s32.totalorder %s794_s13, %s790_s12 }
   0xf   : > { %s1131_s20 = smov (%p36_p0, %s34_s20), 0  ;;  %p57_p5 = scmp.eq.s32.totalorder %s873_s18, 0 }
  0x10   : > { %1108 = sst [smem:[#allocation12_spill]] %s1131_s20  ;;  %p52_p4 = por %p51_p2, %p50_p1 }
  0x11   : > { %s38_s22 = ssub.s32 %s806_s16, %s1131_s20  ;;  %p134_p6 = scmp.eq.s32.totalorder %s873_s18, 2 }
  0x12   : > { %p41_p7 = scmp.eq.s32.totalorder %s38_s22, 0  ;;  %p889_p8 = por %p57_p5, %p56_p3 }
  0x13   : > { %p893_p9 = por %p134_p6, %p50_p1  ;;  %p140_p10 = scmp.eq.s32.totalorder %s511_s19, 2 }
  0x14   : > { %s1109_s23 = scalar_select %p889_p8, 1, 0 }
  0x15   : > { %s1110_s24 = scalar_select %p893_p9, 1, 0 }
  0x16   : > { %s898_s25 = scalar_select %p41_p7, %s798_s14, %s43_s21  }
  0x17   : > { %p900_p11 = por %p140_p10, %p56_p3  ;;  %p575_p12 = scmp.lt.s32.totalorder %s810_s17, 3 }
  0x18   : > { %s906_s27 = sand.u32 1, %s798_s14   ;;  %s183_s29 = sand.u32 1, %s810_s17  }
  0x19   : > { %s1111_s26 = scalar_select %p900_p11, 1, 0 }
  0x1a   : > { %p908_p13 = pnand %p575_p12, %p52_p4  ;;  %s517_s30 = sshll.u32 %s906_s27, 4 }
  0x1b   : > { %s538_s4 = sshll.u32 %s806_s16, 8  ;;  %s187_s5 = scalar_lea.vmem [#allocation5], %s517_s30 }
  0x1c   : > { %s1112_s28 = scalar_select %p908_p13, 1, 0 }
  0x1d   : > { %s194_s6 = sshll.u32 %s187_s5, 4  ;;  %s1113_s1 = sld [smem:[#allocation14_spill]]  ;;  %s920_s6 = int_to_ptr.vmem [resolvable:$true] %s194_s6 }
  0x1e   : > { %s922_s10 = scalar_lea.sflag [#allocation6], %s183_s29  ;;  %p928_p1 = pneg %p908_p13 }
  0x23   : > { %s918_s9 = scalar_lea.hbm %s1113_s1, %s538_s4  ;;  %s639_s30 = scalar_lea.hbm %s1113_s1, 768 }
  0x24   : > { %s634_s11 = scalar_lea.hbm %s918_s9, 256  ;;  %p640_p4 = scmp.lt.u32.totalorder %s918_s9, %s1113_s1 }
  0x25   : > { %p635_p0 = scmp.ne.s32.totalorder %s918_s9, %s634_s11  ;;  %p641_p5 = scmp.lt.u32.totalorder %s639_s30, %s634_s11 }
  0x26   : > { %p643_p7 = scmp.lt.u32.totalorder %s634_s11, %s918_s9 }
  0x27   : > { %p637_p2 = pnand %p928_p1, %p635_p0  ;;  %p642_p6 = por %p641_p5, %p640_p4 }
  0x29   : > { %p638_p3 = pneg %p637_p2  ;;  %p644_p10 = por %p643_p7, %p642_p6 }
  0x2b   : > { %p645_p12 = pnand %p644_p10, %p638_p3 }
  0x2d   : > { %648 = shalt.err (!%p645_p12)
}
  0x2e   : > { %s649_s29 = scalar_lea.vmem %s920_s6, 256  ;;  %s812_s7 = smov [#allocation5]  }
  0x2f   : > { %p650_p0 = scmp.ne.s32.totalorder %s920_s6, %s649_s29  ;;  %s654_s8 = sshll.u32 %s812_s7, 4  ;;  %s655_s8 = int_to_ptr.vmem [resolvable:$false] %s654_s8 }
  0x30   : > { %s656_s21 = scalar_lea.vmem %s655_s8, 512  ;;  %p657_p9 = scmp.lt.s32.totalorder %s920_s6, %s655_s8 }
  0x31   : > { %p652_p2 = pnand %p650_p0, %p928_p1  ;;  %p658_p8 = scmp.lt.s32.totalorder %s656_s21, %s649_s29 }
  0x33   : > { %p653_p11 = pneg %p652_p2  ;;  %p659_p4 = por %p658_p8, %p657_p9 }
  0x35   : > { %p660_p5 = pnand %p659_p4, %p653_p11 }
  0x37   : > { %663 = shalt.err (!%p660_p5)
}
  0x38   : > { %s1102_s11 = smov 64   ;;  %s1103_s22 = smov 4  }
  0x39   : > { %567 = dma.hbm_to_vmem [thread:$0]  (!%p908_p13), %s918_s9, 256, %s920_s6, %s922_s10, %s1102_s11, %s1102_s11, %s1103_s22  }
  0x3a   : > { %p521_p8 = scmp.ge.s32.totalorder %s810_s17, 1  ;;  %p219_p9 = scmp.lt.s32.totalorder %s810_s17, 4 }
  0x3b   : > { %s514_s4 = sshll.u32 %s906_s27, 3  ;;  %s537_s5 = sshll.u32 %s806_s16, 7 }
  0x3c   : > { %p957_p11 = pnand %p521_p8, %p219_p9  ;;  %s1116_s0 = sld [smem:[#allocation13_spill]] }
  0x3d   : > { %s164_s21 = scalar_lea.vmem [#allocation2], %s514_s4  ;;  %s520_s6 = sshll.u32 %s806_s16, 4 }
  0x3e   : > { %s1115_s30 = scalar_select %p957_p11, 1, 0 }
  0x3f   : > { %s173_s1 = sshll.u32 %s164_s21, 4  ;;  %s161_s9 = scalar_lea.sflag [#allocation3], %s906_s27  ;;  %s968_s1 = int_to_ptr.vmem [resolvable:$true] %s173_s1 }
  0x42   : > { %s966_s8 = scalar_lea.hbm %s1116_s0, %s537_s5  ;;  %s669_s5 = scalar_lea.hbm %s1116_s0, 384 }
  0x43   : > { %s664_s11 = scalar_lea.hbm %s966_s8, 128  ;;  %p670_p10 = scmp.lt.u32.totalorder %s966_s8, %s1116_s0 }
  0x44   : > { %p665_p3 = scmp.ne.s32.totalorder %s966_s8, %s664_s11  ;;  %p671_p12 = scmp.lt.u32.totalorder %s669_s5, %s664_s11 }
  0x45   : > { %p673_p2 = scmp.lt.u32.totalorder %s664_s11, %s966_s8 }
  0x46   : > { %p667_p6 = pnand %p665_p3, %p928_p1  ;;  %p672_p0 = por %p671_p12, %p670_p10 }
  0x48   : > { %p668_p7 = pneg %p667_p6  ;;  %p674_p4 = por %p673_p2, %p672_p0 }
  0x4a   : > { %p675_p5 = pnand %p674_p4, %p668_p7 }
  0x4c   : > { %678 = shalt.err (!%p675_p5)
}
  0x4d   : > { %s679_s4 = scalar_lea.vmem %s968_s1, 128  ;;  %s815_s20 = smov [#allocation2]  }
  0x4e   : > { %p680_p8 = scmp.ne.s32.totalorder %s968_s1, %s679_s4  ;;  %s684_s22 = sshll.u32 %s815_s20, 4  ;;  %s685_s22 = int_to_ptr.vmem [resolvable:$false] %s684_s22 }
  0x4f   : > { %s686_s21 = scalar_lea.vmem %s685_s22, 256  ;;  %p687_p6 = scmp.lt.s32.totalorder %s968_s1, %s685_s22 }
  0x50   : > { %p682_p9 = pnand %p680_p8, %p928_p1  ;;  %p688_p11 = scmp.lt.s32.totalorder %s686_s21, %s679_s4 }
  0x52   : > { %p683_p3 = pneg %p682_p9  ;;  %p689_p10 = por %p688_p11, %p687_p6 }
  0x54   : > { %p690_p12 = pnand %p689_p10, %p683_p3 }
  0x56   : > { %693 = shalt.err (!%p690_p12)
}
  0x57   : > { %s1117_s11 = smov 4   ;;  %s1118_s5 = smov 64  }
  0x58   : > { %564 = dma.hbm_to_vmem [thread:$0]  (!%p908_p13), %s966_s8, 128, %s968_s1, %s161_s9, %s1118_s5, %s1118_s5, %s1117_s11  }
  0x59   : > { %s1003_s4 = scalar_lea.hbm %s1098_s2, %s520_s6  ;;  %s207_s20 = scalar_lea.vmem [#allocation7], %s906_s27 }
  0x5a   : > { %s214_s22 = sshll.u32 %s207_s20, 4  ;;  %s694_s21 = scalar_lea.hbm %s1003_s4, 16  ;;  %s215_s22 = int_to_ptr.vmem [resolvable:$true] %s214_s22 }
  0x5b   : > { %p695_p11 = scmp.ne.s32.totalorder %s1003_s4, %s694_s21  ;;  %s699_s8 = scalar_lea.hbm %s1098_s2, 48 }
  0x5c   : > { %p700_p2 = scmp.lt.u32.totalorder %s1003_s4, %s1098_s2  ;;  %p701_p4 = scmp.lt.u32.totalorder %s699_s8, %s694_s21 }
  0x5d   : > { %p697_p7 = pnand %p695_p11, %p928_p1  ;;  %p703_p8 = scmp.lt.u32.totalorder %s694_s21, %s1003_s4 }
  0x5e   : > { %p702_p5 = por %p701_p4, %p700_p2 }
  0x5f   : > { %p698_p0 = pneg %p697_p7 }
  0x60   : > { %p704_p9 = por %p703_p8, %p702_p5 }
  0x62   : > { %p705_p3 = pnand %p704_p9, %p698_p0 }
  0x64   : > { %708 = shalt.err (!%p705_p3)
}
  0x65   : > { %s709_s27 = scalar_lea.vmem %s215_s22, 16  ;;  %s816_s6 = smov [#allocation7]  }
  0x66   : > { %p710_p6 = scmp.ne.s32.totalorder %s215_s22, %s709_s27  ;;  %s714_s5 = sshll.u32 %s816_s6, 4  ;;  %s715_s5 = int_to_ptr.vmem [resolvable:$false] %s714_s5 }
  0x67   : > { %s716_s0 = scalar_lea.vmem %s715_s5, 32  ;;  %p717_p11 = scmp.lt.s32.totalorder %s215_s22, %s715_s5 }
  0x68   : > { %p712_p10 = pnand %p710_p6, %p928_p1  ;;  %p718_p7 = scmp.lt.s32.totalorder %s716_s0, %s709_s27 }
  0x6a   : > { %p713_p12 = pneg %p712_p10  ;;  %p719_p13 = por %p718_p7, %p717_p11 }
  0x6c   : > { %p720_p2 = pnand %p719_p13, %p713_p12 }
  0x6e   : > { %723 = shalt.err (!%p720_p2)
}
  0x6f   : > { %p1119_p4 = scmp.ne.s32.totalorder %s1112_s28, 0  ;;  %p1120_p0 = scmp.ne.s32.totalorder %s1115_s30, 0 }
  0x70   : > { %s1027_s19 = sand.u32 (!%p1120_p0), 1, %s794_s13   ;;  %p1121_p1 = scmp.ne.s32.totalorder (!%p1120_p0), %s1109_s23, 0 }
  0x71   : > { %570 = dma.hbm_to_vmem [thread:$0]  (!%p1119_p4), %s1003_s4, 16, %s215_s22, %s922_s10  }
  0x72   : > { %223 = sbr.rel (%p1120_p0) target bundleno = 367 (0x16f), region = 32  ;;  %s522_s29 = sshll.u32 (!%p1120_p0), %s1027_s19, 3 }
  0x73   : > { %s226_s7 = scalar_lea.sflag (!%p1120_p0), [#allocation3], %s1027_s19  ;;  %s229_s20 = scalar_lea.vmem (!%p1120_p0), [#allocation2], %s522_s29 }
  0x79   : > { %777 = dma.done.wait (%p1121_p1), %s226_s7, 128  }
  0x7a   : > { %779 = vsyncadd (%p1121_p1), %s226_s7, 4294967168  ;;  %s234_s28 = sand.u32 1, %s873_s18   ;;  %s523_s10 = sshll.u32 %s1027_s19, 4 }
  0x7b   : > { %s235_s30 = scalar_lea.sflag [#allocation6], %s234_s28  ;;  %s238_s4 = scalar_lea.vmem [#allocation5], %s523_s10 }
  0x7c   : > { %781 = dma.done.wait (%p1121_p1), %s235_s30, 272  }
  0x7d   : > { %783 = vsyncadd (%p1121_p1), %s235_s30, 4294967024  ;;  %v817_v0 = vmov 0.0   ;;  %vm818_vm0 = vmmov 0   ;;  %v631_v1 = vld [vmem:[%s238_s4] sm:$0xff]   ;;  %v632_v2 = vld [vmem:[%s238_s4 + $0x8] sm:$0xff]   ;;  %vm311_vm1 = vcmask 261120  }
  0x7e   : > { %545 = vmatprep.subr.bf16.mxu0 %v817_v0  ;;  %549 = vmatprep.mubr.msk.bf16.mxu0 %vm818_vm0, %v817_v0  ;;  %v633_v3 = vld [vmem:[%s229_s20] sm:$0xff]   ;;  %s246_s18 = scalar_lea.vmem [#allocation7], %s1027_s19  ;;  %s277_s23 = scalar_lea.vmem [#allocation8], %s522_s29  ;;  %vm364_vm2 = vcmask 257024  }
  0x7f   : > { %546 = vmatpush3.bf16.msra.mxu0 %v631_v1  ;;  %v525_v4 = vld [vmem:[%s246_s18] ss:$0 sm:$0xff]  ;;  %s383_s22 = sshll.u32 %s277_s23, 4  ;;  %s541_s21 = sshll.u32 %s802_s15, 7  ;;  %s1048_s22 = int_to_ptr.vmem [resolvable:$true] %s383_s22 }
  0x80   : > { %547 = vmatprep.subr.bf16.mxu0 %v817_v0  ;;  %s1046_s9 = scalar_lea.hbm %s1099_s3, %s541_s21  ;;  %s368_s11 = scalar_lea.sflag [#allocation4], %s1027_s19 }
  0x81   : > { %s724_s15 = scalar_lea.vmem %s1048_s22, 128  ;;  %p1122_p5 = scmp.ne.s32.totalorder %s1110_s24, 0 }
  0x82   : > { %p725_p13 = scmp.ne.s32.totalorder %s1048_s22, %s724_s15  ;;  %s819_s27 = smov [#allocation8]  }
  0x83   : > { %548 = vmatpush3.bf16.msra.mxu0 %v632_v2  ;;  %s728_s6 = sshll.u32 %s819_s27, 4  ;;  %s729_s6 = int_to_ptr.vmem [resolvable:$false] %s728_s6 }
  0x84   : > { %p726_p8 = pnand %p725_p13, %p1122_p5  ;;  %s730_s5 = scalar_lea.vmem %s729_s6, 256 }
  0x85   : > { %p731_p3 = scmp.lt.s32.totalorder %s1048_s22, %s729_s6  ;;  %p732_p6 = scmp.lt.s32.totalorder %s730_s5, %s724_s15 }
  0x86   : > { %550 = vmatmul.mubr.msk.bf16.vlgmr.msra.gmra.mrb[0].mxu0 %vm311_vm1, %v633_v3  ;;  %p727_p9 = pneg %p726_p8 }
  0x87   : > { %p733_p10 = por %p732_p6, %p731_p3 }
  0x89   : > { %p734_p12 = pnand %p733_p10, %p727_p9 }
 0x159   : > { %v349_v5 = vpop.f32.mrb[0].mxu0 }
 0x15a   : > { %v350_v6 = vadd.f32 %v525_v4, %v349_v5  ;;  %v551_v7 = vpop.f32.mrb[1].mxu0 }
 0x15b   : > { %v352_v8 = vpop.f32.mrb[2].mxu0 }
 0x15c   : > { %v539_v9 = vpack.c.bf16 %v350_v6, %v350_v6  ;;  %v353_v10 = vadd.f32 %v525_v4, %v352_v8  ;;  %v552_v11 = vpop.f32.mrb[3].mxu0 }
 0x15e   : > { %365 = vst.msk [vmem:[%s277_s23] sm:$0xf] %vm364_vm2, %v539_v9  ;;  %v540_v12 = vpack.c.bf16 %v353_v10, %v353_v10 }
 0x160   : > { %366 = vst.msk [vmem:[%s277_s23 + $0x4] sm:$0xf] %vm364_vm2, %v540_v12 }
 0x161   : > { %737 = shalt.err (!%p734_p12)
}
 0x162   : > { %s738_s0 = scalar_lea.hbm %s1046_s9, 128  ;;  %s742_s20 = scalar_lea.hbm %s1099_s3, 384 }
 0x163   : > { %p739_p11 = scmp.ne.s32.totalorder %s1046_s9, %s738_s0  ;;  %p743_p4 = scmp.lt.u32.totalorder %s1046_s9, %s1099_s3 }
 0x164   : > { %p744_p0 = scmp.lt.u32.totalorder %s742_s20, %s738_s0  ;;  %p746_p13 = scmp.lt.u32.totalorder %s738_s0, %s1046_s9 }
 0x165   : > { %p740_p7 = pnand %p739_p11, %p1122_p5 }
 0x166   : > { %p745_p1 = por %p744_p0, %p743_p4 }
 0x167   : > { %p741_p2 = pneg %p740_p7 }
 0x168   : > { %p747_p8 = por %p746_p13, %p745_p1 }
 0x16a   : > { %p748_p9 = pnand %p747_p8, %p741_p2 }
 0x16c   : > { %751 = shalt.err (!%p748_p9)
}
 0x16d   : > { %s820_s30 = smov 64   ;;  %s821_s4 = smov 4  }
 0x16e   : > { %559 = dma.vmem_to_hbm [thread:$0]  (%p1122_p5), %s1048_s22, 128, %s1046_s9, %s368_s11, %s820_s30, %s820_s30, %s821_s4  }
 0x16f PF: > { %p576_p3 = scmp.ge.s32.totalorder %s810_s17, 2  ;;  %s398_s18 = sand.u32 1, %s790_s12  }
 0x170   : > { %p1123_p6 = scmp.ne.s32.totalorder %s1111_s26, 0  ;;  %s399_s23 = scalar_lea.sflag [#allocation4], %s398_s18 }
 0x172   : > { %p572_p10 = pnand %p576_p3, %p1123_p6 }
 0x174   : > { %785 = dma.done.wait (!%p572_p10), %s399_s23, 128  }
 0x175   : > { %787 = vsyncadd (!%p572_p10), %s399_s23, 4294967168  ;;  %s22_s17 = sadd.s32 1, %s810_s17   ;;  %s1124_s24 = sld [smem:[#allocation12_spill]] }
 0x176   : > { %p19_p12 = scmp.ge.s32.totalorder %s22_s17, 5   ;;  %s1125_s12 = smov %s794_s13 }
 0x177   : > { %s1126_s13 = smov %s798_s14  ;;  %s1127_s14 = smov %s898_s25 }
 0x178   : > { %s1128_s15 = smov %s806_s16  ;;  %21 = sbr.rel (!%p19_p12) target bundleno = 11 (0xb), region = 101 }
 0x17b   : > { %s1129_s16 = smov %s1124_s24 }
 0x17f   :  { %404 = vsyncpa [#allocation3], 1 }
 0x180   :  { %406 = vsyncpa [#allocation3 + $0x1], 1 }
 0x181   :  { %407 = vsyncpa [#allocation6], 1 }
 0x182   :  { %409 = vsyncpa [#allocation6 + $0x1], 1 }
 0x183   :  { %410 = vsyncpa [#allocation4], 1 }
 0x184   :  { %412 = vsyncpa [#allocation4 + $0x1], 1 }

// kernel: pallas_multihead_attention.5
= control target key start
LH: loop header
LB: loop body
LE: loop exit
PB: predicated region body
PF: predicated region fallthrough
CT: control target
= control target key end

     0   :  { %8 = vsyncpa [#allocation3], 0  ;;  %s358_s0 = inlined_call_operand.hbm [shape: bf16[1,16,32], index: 0, kind: input, shape index: {}]   ;;  %s359_s1 = inlined_call_operand.hbm [shape: bf16[1,32,32], index: 1, kind: input, shape index: {}]   ;;  %s360_s2 = inlined_call_operand.hbm [shape: f32[1,1,32], index: 2, kind: input, shape index: {}]   ;;  %s361_s3 = inlined_call_operand.hbm [shape: f32[1,16,32], index: 3, kind: output, shape index: {}]  }
   0x1   :  { %9 = vsyncpa [#allocation6], 0 }
   0x2   :  { %10 = vsyncpa [#allocation4], 0  ;;  %s273_s12 = smov [#allocation5]   ;;  %s274_s14 = smov [#allocation2]  }
   0x3   :  { %s28_s13 = sshll.u32 %s273_s12, 4  ;;  %s16_s15 = sshll.u32 %s274_s14, 4  ;;  %s29_s13 = int_to_ptr.vmem [resolvable:$true] %s28_s13  ;;  %s303_s15 = int_to_ptr.vmem [resolvable:$true] %s16_s15 }
   0x4   :  { %s179_s18 = scalar_lea.hbm %s359_s1, 256 }
   0x5   :  { %p180_p0 = scmp.ne.s32.totalorder %s359_s1, %s179_s18  ;;  %p183_p1 = scmp.lt.u32.totalorder %s179_s18, %s359_s1 }
   0x7   :  { %p185_p2 = pnand %p183_p1, %p180_p0 }
   0x9   :  { %188 = shalt.err (!%p185_p2)
}
   0xa   :  { %s189_s23 = scalar_lea.vmem %s29_s13, 256  ;;  %p194_p4 = scmp.lt.s32.totalorder %s29_s13, %s29_s13 }
   0xb   :  { %p190_p3 = scmp.ne.s32.totalorder %s29_s13, %s189_s23  ;;  %p195_p5 = scmp.lt.s32.totalorder %s189_s23, %s189_s23 }
   0xd   :  { %p196_p6 = por %p195_p5, %p194_p4 }
   0xf   :  { %p197_p7 = pnand %p196_p6, %p190_p3 }
  0x11   :  { %200 = shalt.err (!%p197_p7)
}
  0x12   :  { %s275_s24 = smov 64   ;;  %s276_s25 = smov 4  }
  0x13   :  { %34 = dma.hbm_to_vmem [thread:$0]  %s359_s1, 256, %s29_s13, [#allocation6], %s275_s24, %s275_s24, %s276_s25  }
  0x14   :  { %s201_s30 = scalar_lea.hbm %s358_s0, 128 }
  0x15   :  { %p202_p8 = scmp.ne.s32.totalorder %s358_s0, %s201_s30  ;;  %p205_p9 = scmp.lt.u32.totalorder %s201_s30, %s358_s0 }
  0x17   :  { %p207_p10 = pnand %p205_p9, %p202_p8 }
  0x19   :  { %210 = shalt.err (!%p207_p10)
}
  0x1a   :  { %s211_s8 = scalar_lea.vmem %s303_s15, 128  ;;  %p216_p12 = scmp.lt.s32.totalorder %s303_s15, %s303_s15 }
  0x1b   :  { %p212_p11 = scmp.ne.s32.totalorder %s303_s15, %s211_s8  ;;  %p217_p13 = scmp.lt.s32.totalorder %s211_s8, %s211_s8 }
  0x1d   :  { %p218_p0 = por %p217_p13, %p216_p12 }
  0x1f   :  { %p219_p1 = pnand %p218_p0, %p212_p11 }
  0x21   :  { %222 = shalt.err (!%p219_p1)
}
  0x22   :  { %22 = dma.hbm_to_vmem [thread:$0]  %s358_s0, 128, %s303_s15, [#allocation3], %s275_s24, %s275_s24, %s276_s25  }
  0x23   :  { %s277_s10 = smov [#allocation7]   ;;  %s223_s14 = scalar_lea.hbm %s360_s2, 16 }
  0x24   :  { %s41_s11 = sshll.u32 %s277_s10, 4  ;;  %p224_p2 = scmp.ne.s32.totalorder %s360_s2, %s223_s14  ;;  %s42_s11 = int_to_ptr.vmem [resolvable:$true] %s41_s11 }
  0x25   :  { %p227_p3 = scmp.lt.u32.totalorder %s223_s14, %s360_s2 }
  0x27   :  { %p229_p4 = pnand %p227_p3, %p224_p2 }
  0x29   :  { %232 = shalt.err (!%p229_p4)
}
  0x2a   :  { %s233_s20 = scalar_lea.vmem %s42_s11, 16  ;;  %s237_s0 = scalar_lea.vmem %s42_s11, 32 }
  0x2b   :  { %p234_p5 = scmp.ne.s32.totalorder %s42_s11, %s233_s20  ;;  %p238_p6 = scmp.lt.s32.totalorder %s42_s11, %s42_s11 }
  0x2c   :  { %p239_p7 = scmp.lt.s32.totalorder %s237_s0, %s233_s20 }
  0x2e   :  { %p240_p8 = por %p239_p7, %p238_p6 }
  0x30   :  { %p241_p9 = pnand %p240_p8, %p234_p5 }
  0x32   :  { %244 = shalt.err (!%p241_p9)
}
  0x33   :  { %44 = dma.hbm_to_vmem [thread:$0]  %s360_s2, 16, %s42_s11, [#allocation6]  }
  0x34   :  { %267 = dma.done.wait [#allocation3], 128  }
  0x35   :  { %268 = vsyncadd [#allocation3], 4294967168 }
  0x36   :  { %269 = dma.done.wait [#allocation6], 272  }
  0x37   :  { %270 = vsyncadd [#allocation6], 4294967024  ;;  %v278_v0 = vmov 0.0   ;;  %vm279_vm0 = vmmov 0   ;;  %v176_v1 = vld [vmem:[#allocation5] sm:$0xff]   ;;  %v177_v2 = vld [vmem:[#allocation5 + $0x8] sm:$0xff]  }
  0x38   :  { %158 = vmatprep.subr.bf16.mxu0 %v278_v0  ;;  %162 = vmatprep.mubr.msk.bf16.mxu0 %vm279_vm0, %v278_v0  ;;  %v178_v3 = vld [vmem:[#allocation2] sm:$0xff]   ;;  %vm85_vm1 = vcmask 261120   ;;  %v150_v4 = vld [vmem:[#allocation7] ss:$0 sm:$0xff]  ;;  %s280_s22 = smov [#allocation8]  }
  0x39   :  { %159 = vmatpush3.bf16.msra.mxu0 %v176_v1  ;;  %s137_s23 = sshll.u32 %s280_s22, 4  ;;  %s138_s23 = int_to_ptr.vmem [resolvable:$true] %s137_s23 }
  0x3a   :  { %160 = vmatprep.subr.bf16.mxu0 %v278_v0  ;;  %s245_s2 = scalar_lea.vmem %s138_s23, 256  ;;  %p250_p11 = scmp.lt.s32.totalorder %s138_s23, %s138_s23 }
  0x3b   :  { %p246_p10 = scmp.ne.s32.totalorder %s138_s23, %s245_s2  ;;  %p251_p12 = scmp.lt.s32.totalorder %s245_s2, %s245_s2 }
  0x3d   :  { %161 = vmatpush3.bf16.msra.mxu0 %v177_v2  ;;  %p252_p13 = por %p251_p12, %p250_p11 }
  0x3f   :  { %p253_p0 = pnand %p252_p13, %p246_p10 }
  0x40   :  { %163 = vmatmul.mubr.msk.bf16.vlgmr.msra.gmra.mrb[0].mxu0 %vm85_vm1, %v178_v3 }
 0x113   :  { %v123_v5 = vpop.f32.mrb[0].mxu0 }
 0x114   :  { %v124_v6 = vadd.f32 %v150_v4, %v123_v5  ;;  %v164_v7 = vpop.f32.mrb[1].mxu0 }
 0x115   :  { %v126_v8 = vpop.f32.mrb[2].mxu0 }
 0x116   :  { %130 = vst.msk [vmem:[#allocation8] sm:$0xff] %vm85_vm1, %v124_v6  ;;  %v127_v9 = vadd.f32 %v150_v4, %v126_v8  ;;  %v165_v10 = vpop.f32.mrb[3].mxu0 }
 0x118   :  { %131 = vst.msk [vmem:[#allocation8 + $0x8] sm:$0xff] %vm85_vm1, %v127_v9 }
 0x119   :  { %256 = shalt.err (!%p253_p0)
}
 0x11a   :  { %s257_s26 = scalar_lea.hbm %s361_s3, 256 }
 0x11b   :  { %p258_p1 = scmp.ne.s32.totalorder %s361_s3, %s257_s26  ;;  %p261_p2 = scmp.lt.u32.totalorder %s257_s26, %s361_s3 }
 0x11d   :  { %p263_p3 = pnand %p261_p2, %p258_p1 }
 0x11f   :  { %266 = shalt.err (!%p263_p3)
}
 0x120   :  { %s281_s4 = smov 128   ;;  %s282_s5 = smov 8  }
 0x121   :  { %143 = dma.vmem_to_hbm [thread:$0]  %s138_s23, 256, %s361_s3, [#allocation4], %s281_s4, %s281_s4, %s282_s5  }
 0x122   :  { %271 = dma.done.wait [#allocation4], 256  }
 0x123   :  { %272 = vsyncadd [#allocation4], 4294967040 }
 0x124   :  { %147 = vsyncpa [#allocation3], 1 }
 0x125   :  { %148 = vsyncpa [#allocation6], 1 }
 0x126   :  { %149 = vsyncpa [#allocation4], 1 }

// kernel: pallas_multihead_attention.4
= control target key start
LH: loop header
LB: loop body
LE: loop exit
PB: predicated region body
PF: predicated region fallthrough
CT: control target
= control target key end

     0   :  { %s1963_s0 = inlined_call_operand.hbm [shape: s32[2], index: 0, kind: input, shape index: {}]   ;;  %s1964_s2 = inlined_call_operand.hbm [shape: bf16[2,8,32], index: 2, kind: input, shape index: {}]   ;;  %s1965_s3 = inlined_call_operand.hbm [shape: bf16[2,8,32], index: 3, kind: input, shape index: {}]   ;;  %s1966_s4 = inlined_call_operand.hbm [shape: bf16[2,8,32], index: 4, kind: input, shape index: {}]   ;;  %s1967_s5 = inlined_call_operand.hbm [shape: bf16[2,8,32], index: 5, kind: output, shape index: {}]   ;;  %s1968_s1 = inlined_call_operand.hbm [shape: s32[2], index: 1, kind: input, shape index: {}]  }
   0x1   :  { %1974 = sst [smem:[#allocation22_spill]] %s1965_s3  ;;  %s1291_s20 = scalar_lea.hbm %s1963_s0, 16 }
   0x2   :  { %p1292_p0 = scmp.ne.s32.totalorder %s1963_s0, %s1291_s20  ;;  %p1295_p1 = scmp.lt.u32.totalorder %s1291_s20, %s1963_s0 }
   0x4   :  { %p1297_p2 = pnand %p1295_p1, %p1292_p0 }
   0x6   :  { %1300 = shalt.err (!%p1297_p2)  }
   0x7   :  { %s1491_s25 = smov [#allocation6]   ;;  %s1301_s30 = scalar_lea.hbm %s1968_s1, 16 }
   0x8   :  { %11 = dma.hbm_to_smem %s1963_s0, 16, %s1491_s25, [#allocation5] }
   0x9   :  { %p1302_p3 = scmp.ne.s32.totalorder %s1968_s1, %s1301_s30  ;;  %p1305_p4 = scmp.lt.u32.totalorder %s1301_s30, %s1968_s1 }
   0xb   :  { %p1307_p5 = pnand %p1305_p4, %p1302_p3 }
   0xd   :  { %1310 = shalt.err (!%p1307_p5)  }
   0xe   :  { %s1492_s10 = smov [#allocation7]  }
   0xf   :  { %13 = dma.hbm_to_smem %s1968_s1, 16, %s1492_s10, [#allocation5] }
  0x10   :  { %1453 = dma.done.wait [#allocation5], 32 }
  0x11   :  { %1454 = vsyncadd [#allocation5], 4294967264 }
  0x12   :  { %15 = sfence }
  0x13   :  { %16 = vsyncpa [#allocation9], 0 }
  0x14   :  { %18 = vsyncpa [#allocation9 + $0x1], 0 }
  0x15   :  { %19 = vsyncpa [#allocation12], 0 }
  0x16   :  { %21 = vsyncpa [#allocation12 + $0x1], 0 }
  0x17   :  { %22 = vsyncpa [#allocation10], 0 }
  0x18   :  { %24 = vsyncpa [#allocation10 + $0x1], 0  ;;  %s1562_s0 = smov 0   ;;  %s1564_s13 = smov 0  }
  0x19   :  { %s1566_s14 = smov 0   ;;  %s1568_s15 = smov 0  }
  0x1a   :  { %s1570_s16 = smov 0   ;;  %s1572_s1 = smov 0  }
  0x1b LB: > { %1975 = sst [smem:[#allocation19_spill]] %s1485_s16  ;;  %s1593_s17 = sadd.s32 4294967295, %s1489_s1   ;;  %s1489_s1 = sphi %s1572_s1, %s30_s1   ;;  %s1485_s16 = sphi %s1570_s16, %s1996_s16   ;;  %s1481_s15 = sphi %s1568_s15, %s1995_s15   ;;  %s1477_s14 = sphi %s1566_s14, %s1999_s14   ;;  %s1473_s13 = sphi %s1564_s13, %s1998_s13   ;;  %s1469_s0 = sphi %s1562_s0, %s1997_s0  }
  0x1c   : > { %s1085_s18 = sadd.s32 4294967294, %s1489_s1   ;;  %s49_s19 = sadd.s32 1, %s1485_s16 }
  0x1d   : > { %s58_s20 = sadd.s32 1, %s1477_s14  ;;  %p51_p6 = scmp.ge.s32.totalorder %s49_s19, 2 }
  0x1e   : > { %p65_p7 = scmp.ne.s32.totalorder %s1477_s14, %s1473_s13  ;;  %p66_p8 = scmp.eq.s32.totalorder %s1489_s1, 0 }
  0x1f   : > { %p71_p9 = scmp.ne.s32.totalorder %s1473_s13, %s1469_s0  ;;  %s2001_s19 = smov (%p51_p6, %s49_s19), 0 }
  0x20   : > { %1976 = sst [smem:[#allocation20_spill]] %s2001_s19  ;;  %p1605_p10 = por %p66_p8, %p65_p7 }
  0x21   : > { %p72_p11 = scmp.eq.s32.totalorder %s1593_s17, 0  ;;  %s53_s22 = ssub.s32 %s1485_s16, %s2001_s19 }
  0x22   : > { %p153_p12 = scmp.eq.s32.totalorder %s1593_s17, 1  ;;  %p56_p13 = scmp.eq.s32.totalorder %s53_s22, 0 }
  0x23   : > { %p1613_p0 = por %p72_p11, %p71_p9  ;;  %p159_p2 = scmp.eq.s32.totalorder %s1085_s18, 1 }
  0x24   : > { %p1617_p1 = por %p153_p12, %p65_p7  ;;  %p1200_p5 = scmp.lt.s32.totalorder %s1489_s1, 2 }
  0x25   : > { %s1978_s23 = scalar_select %p1613_p0, 1, 0 }
  0x26   : > { %s1979_s24 = scalar_select %p1617_p1, 1, 0 }
  0x27   : > { %s1622_s25 = scalar_select %p56_p13, %s1477_s14, %s58_s20  }
  0x28   : > { %p1624_p3 = por %p159_p2, %p71_p9  ;;  %s179_s27 = sand.u32 1, %s1477_s14  }
  0x29   : > { %1980 = sst [smem:[#allocation21_spill]] %s1622_s25  ;;  %s1633_s28 = sshll.u32 %s179_s27, 2 }
  0x2a   : > { %s1981_s26 = scalar_select %p1624_p3, 1, 0 }
  0x2b   : > { %s1636_s29 = sshll.u32 %s1485_s16, 6  ;;  %p1640_p6 = pnand %p1200_p5, %p1605_p10 }
  0x2c   : > { %s198_s6 = sand.u32 1, %s1489_s1   ;;  %s1983_s3 = sld [smem:[#allocation22_spill]] }
  0x2d   : > { %s1982_s30 = scalar_select %p1640_p6, 1, 0 }
  0x2e   : > { %s202_s10 = scalar_lea.vmem [#allocation11], %s1633_s28  ;;  %s1656_s12 = scalar_lea.sflag [#allocation12], %s198_s6 }
  0x2f   : > { %s210_s11 = sshll.u32 %s202_s10, 4  ;;  %p1662_p10 = pneg %p1640_p6  ;;  %s1653_s11 = int_to_ptr.vmem [resolvable:$true] %s210_s11 }
  0x32   : > { %s1649_s9 = scalar_lea.hbm %s1983_s3, %s1636_s29  ;;  %s1316_s7 = scalar_lea.hbm %s1983_s3, 128 }
  0x33   : > { %s1311_s18 = scalar_lea.hbm %s1649_s9, 64  ;;  %p1317_p13 = scmp.lt.u32.totalorder %s1649_s9, %s1983_s3 }
  0x34   : > { %p1312_p9 = scmp.ne.s32.totalorder %s1649_s9, %s1311_s18  ;;  %p1318_p2 = scmp.lt.u32.totalorder %s1316_s7, %s1311_s18 }
  0x35   : > { %p1320_p4 = scmp.lt.u32.totalorder %s1311_s18, %s1649_s9 }
  0x36   : > { %p1314_p11 = pnand %p1662_p10, %p1312_p9  ;;  %p1319_p5 = por %p1318_p2, %p1317_p13 }
  0x38   : > { %p1315_p12 = pneg %p1314_p11  ;;  %p1321_p7 = por %p1320_p4, %p1319_p5 }
  0x3a   : > { %p1322_p8 = pnand %p1321_p7, %p1315_p12 }
  0x3c   : > { %1325 = shalt.err (!%p1322_p8)
}
  0x3d   : > { %s1326_s6 = scalar_lea.vmem %s1653_s11, 64  ;;  %s1493_s21 = smov [#allocation11]  }
  0x3e   : > { %p1327_p9 = scmp.ne.s32.totalorder %s1653_s11, %s1326_s6  ;;  %s1331_s22 = sshll.u32 %s1493_s21, 4  ;;  %s1332_s22 = int_to_ptr.vmem [resolvable:$false] %s1331_s22 }
  0x3f   : > { %s1333_s8 = scalar_lea.vmem %s1332_s22, 128  ;;  %p1334_p1 = scmp.lt.s32.totalorder %s1653_s11, %s1332_s22 }
  0x40   : > { %p1329_p11 = pnand %p1327_p9, %p1662_p10  ;;  %p1335_p0 = scmp.lt.s32.totalorder %s1333_s8, %s1326_s6 }
  0x42   : > { %p1330_p3 = pneg %p1329_p11  ;;  %p1336_p13 = por %p1335_p0, %p1334_p1 }
  0x44   : > { %p1337_p2 = pnand %p1336_p13, %p1330_p3 }
  0x46   : > { %1340 = shalt.err (!%p1337_p2)
}
  0x47   : > { %1192 = dma.hbm_to_vmem [thread:$0]  (!%p1640_p6), %s1649_s9, 64, %s1653_s11, %s1656_s12  }
  0x48   : > { %p1985_p4 = scmp.lt.s32.totalorder %s1489_s1, 3  ;;  %p1986_p7 = scmp.ge.s32.totalorder %s1489_s1, 1 }
  0x49   : > { %s1698_s6 = scalar_lea.hbm %s1964_s2, %s1636_s29  ;;  %s183_s21 = scalar_lea.vmem [#allocation8], %s1633_s28 }
  0x4a   : > { %p1690_p8 = pnand %p1986_p7, %p1985_p4  ;;  %s191_s22 = sshll.u32 %s183_s21, 4  ;;  %s1701_s22 = int_to_ptr.vmem [resolvable:$true] %s191_s22 }
  0x4b   : > { %s1707_s8 = scalar_lea.hbm %s1966_s4, %s1636_s29  ;;  %s180_s3 = scalar_lea.sflag [#allocation9], %s179_s27 }
  0x4c   : > { %s1987_s18 = scalar_select %p1690_p8, 1, 0 }
  0x4d   : > { %s1341_s19 = scalar_lea.hbm %s1698_s6, 64  ;;  %s1346_s16 = scalar_lea.hbm %s1964_s2, 128 }
  0x4e   : > { %p1342_p0 = scmp.ne.s32.totalorder %s1698_s6, %s1341_s19  ;;  %p1347_p12 = scmp.lt.u32.totalorder %s1698_s6, %s1964_s2 }
  0x4f   : > { %p1348_p5 = scmp.lt.u32.totalorder %s1346_s16, %s1341_s19  ;;  %p1350_p11 = scmp.lt.u32.totalorder %s1341_s19, %s1698_s6 }
  0x50   : > { %p1344_p1 = pnand %p1342_p0, %p1662_p10 }
  0x51   : > { %p1349_p9 = por %p1348_p5, %p1347_p12 }
  0x52   : > { %p1345_p3 = pneg %p1344_p1 }
  0x53   : > { %p1351_p13 = por %p1350_p11, %p1349_p9 }
  0x55   : > { %p1352_p2 = pnand %p1351_p13, %p1345_p3 }
  0x57   : > { %1355 = shalt.err (!%p1352_p2)
}
  0x58   : > { %s1356_s27 = scalar_lea.vmem %s1701_s22, 64  ;;  %s1494_s29 = smov [#allocation8]  }
  0x59   : > { %p1357_p4 = scmp.ne.s32.totalorder %s1701_s22, %s1356_s27  ;;  %s1361_s9 = sshll.u32 %s1494_s29, 4  ;;  %s1362_s9 = int_to_ptr.vmem [resolvable:$false] %s1361_s9 }
  0x5a   : > { %s1363_s25 = scalar_lea.vmem %s1362_s9, 128  ;;  %p1364_p1 = scmp.lt.s32.totalorder %s1701_s22, %s1362_s9 }
  0x5b   : > { %p1359_p7 = pnand %p1357_p4, %p1662_p10  ;;  %p1365_p8 = scmp.lt.s32.totalorder %s1363_s25, %s1356_s27 }
  0x5d   : > { %p1360_p0 = pneg %p1359_p7  ;;  %p1366_p12 = por %p1365_p8, %p1364_p1 }
  0x5f   : > { %p1367_p5 = pnand %p1366_p12, %p1360_p0 }
  0x61   : > { %1370 = shalt.err (!%p1367_p5)
}
  0x62   : > { %1189 = dma.hbm_to_vmem [thread:$0]  (!%p1640_p6), %s1698_s6, 64, %s1701_s22, %s180_s3  }
  0x63   : > { %s221_s16 = scalar_lea.vmem [#allocation13], %s1633_s28  ;;  %s1371_s11 = scalar_lea.hbm %s1707_s8, 64 }
  0x64   : > { %s229_s19 = sshll.u32 %s221_s16, 4  ;;  %p1372_p3 = scmp.ne.s32.totalorder %s1707_s8, %s1371_s11  ;;  %s230_s19 = int_to_ptr.vmem [resolvable:$true] %s229_s19 }
  0x65   : > { %s1376_s21 = scalar_lea.hbm %s1966_s4, 128  ;;  %p1377_p11 = scmp.lt.u32.totalorder %s1707_s8, %s1966_s4 }
  0x66   : > { %p1374_p8 = pnand %p1372_p3, %p1662_p10  ;;  %p1378_p13 = scmp.lt.u32.totalorder %s1376_s21, %s1371_s11 }
  0x67   : > { %p1380_p4 = scmp.lt.u32.totalorder %s1371_s11, %s1707_s8 }
  0x68   : > { %p1375_p9 = pneg %p1374_p8  ;;  %p1379_p2 = por %p1378_p13, %p1377_p11 }
  0x6a   : > { %p1381_p7 = por %p1380_p4, %p1379_p2 }
  0x6c   : > { %p1382_p0 = pnand %p1381_p7, %p1375_p9 }
  0x6e   : > { %1385 = shalt.err (!%p1382_p0)
}
  0x6f   : > { %s1386_s3 = scalar_lea.vmem %s230_s19, 64  ;;  %s1495_s28 = smov [#allocation13]  }
  0x70   : > { %p1387_p1 = scmp.ne.s32.totalorder %s230_s19, %s1386_s3  ;;  %s1391_s6 = sshll.u32 %s1495_s28, 4  ;;  %s1392_s6 = int_to_ptr.vmem [resolvable:$false] %s1391_s6 }
  0x71   : > { %s1393_s22 = scalar_lea.vmem %s1392_s6, 128  ;;  %p1394_p3 = scmp.lt.s32.totalorder %s230_s19, %s1392_s6 }
  0x72   : > { %p1389_p12 = pnand %p1387_p1, %p1662_p10  ;;  %p1395_p8 = scmp.lt.s32.totalorder %s1393_s22, %s1386_s3 }
  0x74   : > { %p1390_p5 = pneg %p1389_p12  ;;  %p1396_p6 = por %p1395_p8, %p1394_p3 }
  0x76   : > { %p1397_p11 = pnand %p1396_p6, %p1390_p5 }
  0x78   : > { %1400 = shalt.err (!%p1397_p11)
}
  0x79   : > { %p1988_p13 = scmp.ne.s32.totalorder %s1982_s30, 0  ;;  %p1989_p9 = scmp.ne.s32.totalorder %s1987_s18, 0 }
  0x7a   : > { %s1754_s20 = sand.u32 (!%p1989_p9), 1, %s1473_s13   ;;  %p1990_p6 = scmp.ne.s32.totalorder (!%p1989_p9), %s1978_s23, 0 }
  0x7b   : > { %1195 = dma.hbm_to_vmem [thread:$0]  (!%p1988_p13), %s1707_s8, 64, %s230_s19, %s1656_s12  }
  0x7c   : > { %238 = sbr.rel (%p1989_p9) target bundleno = 1584 (0x630), region = 32  ;;  %s1757_s9 = sshll.u32 (!%p1989_p9), %s1754_s20, 2 }
  0x7d   : > { %s241_s25 = scalar_lea.sflag (!%p1989_p9), [#allocation9], %s1754_s20  ;;  %s244_s16 = scalar_lea.vmem (!%p1989_p9), [#allocation8], %s1757_s9 }
  0x83   : > { %1456 = dma.done.wait (%p1990_p6), %s241_s25, 64  }
  0x84   : > { %1458 = vsyncadd (%p1990_p6), %s241_s25, 4294967232  ;;  %s249_s30 = sand.u32 1, %s1593_s17   ;;  %s253_s18 = scalar_lea.vmem [#allocation11], %s1757_s9 }
  0x85   : > { %s250_s12 = scalar_lea.sflag [#allocation12], %s249_s30 }
  0x86   : > { %1460 = dma.done.wait (%p1990_p6), %s250_s12, 128  }
  0x87   : > { %1462 = vsyncadd (%p1990_p6), %s250_s12, 4294967168  ;;  %v1496_v0 = vmov 0.0   ;;  %vm1497_vm0 = vmmov 0   ;;  %vm323_vm1 = vcmask 64512   ;;  %v313_v1 = vld [vmem:[%s253_s18] sm:$0xf]  ;;  %v316_v5 = vlaneseq }
  0x88   : > { %1130 = vmatprep.subr.bf16.mxu0 %v1496_v0  ;;  %1132 = vmatprep.mubr.msk.bf16.mxu0 %vm1497_vm0, %v1496_v0  ;;  %v328_v2 = vsel %vm323_vm1, %v313_v1, 0  ;;  %v312_v3 = vld [vmem:[%s244_s16] sm:$0xf]  ;;  %vm300_vm2 = vcmask 7168   ;;  %v1498_v4 = vmov -inf   ;;  %s1795_s17 = sld [smem:[#allocation6 + %s1481_s15]]  ;;  %v1102_v17 = vcombine.low %v313_v1, %v313_v1 }
  0x89   : > { %1136 = vmatprep.subr.bf16.mxu1 %v1496_v0  ;;  %1138 = vmatprep.mubr.msk.bf16.mxu1 %vm1497_vm0, %v1496_v0  ;;  %301 = vst.msk [vmem:[#allocation2] sm:$0xff] %vm300_vm2, %v1498_v4  ;;  %302 = vst.msk [vmem:[#allocation2 + $0x8] sm:$0xff] %vm300_vm2, %v1498_v4  ;;  %v317_v6 = vand.u32 127, %v316_v5  ;;  %v1499_v8 = vmov -1e+30   ;;  %v1500_v16 = vmov 0   ;;  %v1101_v18 = vcombine.low %v312_v3, %v312_v3 }
  0x8a   : > { %1131 = vmatpush3.bf16.xpose.msra.mxu0 %v328_v2  ;;  %303 = vst.msk [vmem:[#allocation2 + $0x10] sm:$0xff] %vm300_vm2, %v1498_v4  ;;  %304 = vst.msk [vmem:[#allocation2 + $0x18] sm:$0xff] %vm300_vm2, %v1498_v4  ;;  %1263 = vset.pattern.permute.xlu0 %v1500_v16  ;;  %s1501_s23 = smov 120   ;;  %s1502_s8 = smov 112   ;;  %vm405_vm4 = vcmask 1043456   ;;  %vm309_vm5 = vcmask 261120  }
  0x8b   : > { %1148 = vmatprep.subr.bf16.mxu0 %v1496_v0  ;;  %305 = vst.msk [vmem:[#allocation3] sm:$0xff] %vm300_vm2, %v1496_v0  ;;  %306 = vst.msk [vmem:[#allocation3 + $0x8] sm:$0xff] %vm300_vm2, %v1496_v0  ;;  %1264 = vset.pattern.permute.xlu1 %v1500_v16  ;;  %s1503_s19 = smov 104   ;;  %s262_s11 = scalar_lea.vmem [#allocation13], %s1757_s9  ;;  %vm597_vm6 = vcmask 130112   ;;  %vm736_vm7 = vcmask 195712  }
  0x8c   : > { %307 = vst.msk [vmem:[#allocation3 + $0x10] sm:$0xff] %vm300_vm2, %v1496_v0  ;;  %308 = vst.msk [vmem:[#allocation3 + $0x18] sm:$0xff] %vm300_vm2, %v1496_v0  ;;  %460 = vrot.lane.b32.xlu1 %v1102_v17, %s1501_s23  ;;  %v314_v23 = vld [vmem:[%s262_s11] sm:$0xf]  ;;  %s1504_s7 = smov 8   ;;  %s1505_s10 = smov 16  }
  0x8d   : > { %v407_v24 = vsel %vm405_vm4, %v314_v23, 0  ;;  %v1104_v2 = vcombine.low %v314_v23, %v314_v23  ;;  %310 = vst.msk [vmem:[#allocation4] sm:$0xff] %vm309_vm5, %v1496_v0  ;;  %s1506_s21 = smov 24   ;;  %vm875_vm8 = vcmask 261312   ;;  %s881_s27 = sld [smem:[#allocation7 + %s1481_s15]]  ;;  %vm939_vm12 = vcmask 257024  }
  0x8e   : > { %v320_v7 = vstv %s1795_s17  ;;  %1137 = vmatpush3.bf16.msra.mxu1 %v407_v24  ;;  %p929_p10 = scmp.gt.s32.totalorder %s1795_s17, 0  ;;  %s1111_s3 = sshll.u32 %s1481_s15, 6 }
  0x8f   : > { %vm321_vm3 = vcmp.lt.s32.totalorder %v317_v6, %v320_v7  ;;  %1142 = vmatprep.subr.bf16.mxu1 %v1496_v0  ;;  %s294_s28 = scalar_lea.vmem [#allocation14], %s1757_s9  ;;  %s1914_s16 = scalar_lea.hbm %s1967_s5, %s1111_s3 }
  0x90   : > { %v1799_v9 = vsel %vm321_vm3, 0.0, %v1499_v8  ;;  %455 = vrot.lane.b32.xlu1 %v1101_v18, %s1501_s23  ;;  %v1809_v19 = vld [vmem:[#allocation2] sm:$0xff]  ;;  %v509_v61 = vld [vmem:[#allocation2 + $0x8] sm:$0xff]  ;;  %s930_s29 = scalar_select %p929_p10, 1, 0 }
  0x91   : > { %1133 = vmatmul.mubr.msk.bf16.vlgmr.msra.gmra.mrb[0].mxu0 %vm323_vm1, %v312_v3  ;;  %v651_v3 = vld [vmem:[#allocation2 + $0x10] sm:$0xff]  ;;  %v1858_v8 = vld [vmem:[#allocation2 + $0x18] sm:$0xff]  ;;  %s956_s6 = sshll.u32 %s294_s28, 4  ;;  %s942_s30 = scalar_lea.sflag [#allocation10], %s1754_s20  ;;  %s1916_s6 = int_to_ptr.vmem [resolvable:$true] %s956_s6 }
  0x92   : > { %1150 = vmatprep.mubr.msk.bf16.mxu0 %vm1497_vm0, %v1496_v0  ;;  %s1401_s12 = scalar_lea.vmem %s1916_s6, 64  ;;  %p1991_p4 = scmp.ne.s32.totalorder %s1979_s24, 0 }
  0x93   : > { %p1402_p2 = scmp.ne.s32.totalorder %s1916_s6, %s1401_s12  ;;  %s1507_s15 = smov [#allocation14]  }
  0x94   : > { %602 = vrot.lane.b32.xlu1 %v1102_v17, %s1502_s8  ;;  %s1405_s9 = sshll.u32 %s1507_s15, 4  ;;  %s1406_s9 = int_to_ptr.vmem [resolvable:$false] %s1405_s9 }
  0x95   : > { %p1403_p7 = pnand %p1402_p2, %p1991_p4  ;;  %s1407_s18 = scalar_lea.vmem %s1406_s9, 128 }
  0x96   : > { %p1408_p1 = scmp.lt.s32.totalorder %s1916_s6, %s1406_s9  ;;  %p1409_p12 = scmp.lt.s32.totalorder %s1407_s18, %s1401_s12 }
  0x97   : > { %p1404_p0 = pneg %p1403_p7 }
  0x98   : > { %600 = vrot.lane.b32.xlu1 %v1101_v18, %s1502_s8  ;;  %p1410_p5 = por %p1409_p12, %p1408_p1 }
  0x9a   : > { %p1411_p3 = pnand %p1410_p5, %p1404_p0 }
  0x9c   : > { %741 = vrot.lane.b32.xlu1 %v1102_v17, %s1503_s19 }
  0xa0   : > { %739 = vrot.lane.b32.xlu1 %v1101_v18, %s1503_s19 }
  0xfe   : > { %v461_v28 = vpop.permute.xlu1 %460 }
  0xff   : > { %v466_v31 = vsel %vm323_vm1, %v461_v28, 0 }
 0x102   : > { %v456_v29 = vpop.permute.xlu1 %455 }
 0x106   : > { %v603_v33 = vpop.permute.xlu1 %602 }
 0x107   : > { %v608_v35 = vsel %vm323_vm1, %v603_v33, 0 }
 0x10a   : > { %v601_v34 = vpop.permute.xlu1 %600 }
 0x10e   : > { %v742_v36 = vpop.permute.xlu1 %741 }
 0x10f   : > { %v747_v37 = vsel %vm323_vm1, %v742_v36, 0 }
 0x112   : > { %v740_v38 = vpop.permute.xlu1 %739 }
 0x164   : > { %v364_v10 = vpop.f32.mrb[0].mxu0 }
 0x165   : > { %v365_v11 = vadd.f32 %v364_v10, %v1799_v9  ;;  %v1134_v12 = vpop.f32.mrb[1].mxu0 }
 0x166   : > { %v367_v13 = vpop.f32.mrb[2].mxu0 }
 0x167   : > { %v1135_v14 = vpop.f32.mrb[3].mxu0  ;;  %v371_v15 = vsel %vm323_vm1, %v365_v11, -inf }
 0x168   : > { %372 = vmax.xlane.f32.xlu0 %v371_v15 }
 0x1f5   : > { %v373_v20 = vpop.xlane.xlu0 %372 }
 0x1f6   : > { %v1812_v21 = vmax.f32 %v1809_v19, %v373_v20 }
 0x1f8   : > { %v375_v22 = vsub.f32 %v1809_v19, %v1812_v21  ;;  %451 = vst.msk [vmem:[#allocation2] sm:$0xff] %vm300_vm2, %v1812_v21  ;;  %380 = vperm.xlu0 %1263, %v1812_v21  }
 0x1fa   : > { %v376_v62 = vmul.f32 1.442695, %v375_v22 }
 0x277   : > { %v381_v25 = vpop.permute.xlu0 %380 }
 0x278   : > { %v383_v26 = vsub.f32 %v365_v11, %v381_v25 }
 0x27a   : > { %v384_v27 = vmul.f32 1.442695, %v383_v26  ;;  %v394_v26 = vld [vmem:[#allocation4] sm:$0xff] }
 0x27c   : > { %1267 = vpow2.f32 %v384_v27 }
 0x27d   : > { %1269 = vpow2.f32 %v376_v62 }
 0x286   : > { %v1822_v30 = vpop.eup %1267 }
 0x287   : > { %v401_v32 = vpack.c.bf16 %v1822_v30, %v1822_v30  ;;  %v1856_v7 = vpop.eup %1269  ;;  %v388_v13 = vsel %vm323_vm1, %v1822_v30, 0.0 }
 0x289   : > { %1139 = vmatmul.mubr.msk.bf16.vlgmr.msra.gmra.mrb[0].mxu1 %vm323_vm1, %v401_v32 }
 0x28a   : > { %1143 = vmatpush3.bf16.xpose.msra.mxu1 %v466_v31  ;;  %1144 = vmatprep.mubr.msk.bf16.mxu1 %vm1497_vm0, %v1496_v0 }
 0x28b   : > { %1154 = vmatprep.subr.bf16.mxu1 %v1496_v0 }
 0x291   : > { %1145 = vmatmul.mubr.msk.bf16.vlgmr.msra.gmra.mrb[4].mxu1 %vm323_vm1, %v456_v29 }
 0x292   : > { %1155 = vmatpush3.bf16.xpose.msra.mxu1 %v608_v35  ;;  %1156 = vmatprep.mubr.msk.bf16.mxu1 %vm1497_vm0, %v1496_v0 }
 0x293   : > { %1166 = vmatprep.subr.bf16.mxu1 %v1496_v0 }
 0x299   : > { %1157 = vmatmul.mubr.msk.bf16.vlgmr.msra.gmra.mrb[8].mxu1 %vm323_vm1, %v601_v34 }
 0x29a   : > { %1167 = vmatpush3.bf16.xpose.msra.mxu1 %v747_v37  ;;  %1168 = vmatprep.mubr.msk.bf16.mxu1 %vm1497_vm0, %v1496_v0 }
 0x2a1   : > { %1169 = vmatmul.mubr.msk.bf16.vlgmr.msra.gmra.mrb[12].mxu1 %vm323_vm1, %v740_v38 }
 0x35c   : > { %v1841_v39 = vpop.f32.mrb[0].mxu1 }
 0x35d   : > { %v1140_v40 = vpop.f32.mrb[1].mxu1 }
 0x35e   : > { %v446_v41 = vpop.f32.mrb[2].mxu1 }
 0x35f   : > { %v1141_v42 = vpop.f32.mrb[3].mxu1 }
 0x364   : > { %v502_v43 = vpop.f32.mrb[4].mxu1 }
 0x365   : > { %v503_v44 = vadd.f32 %v502_v43, %v1799_v9  ;;  %v1146_v45 = vpop.f32.mrb[5].mxu1 }
 0x366   : > { %v505_v46 = vpop.f32.mrb[6].mxu1 }
 0x367   : > { %v1147_v47 = vpop.f32.mrb[7].mxu1  ;;  %v510_v48 = vsel %vm323_vm1, %v503_v44, -inf }
 0x368   : > { %511 = vmax.xlane.f32.xlu1 %v510_v48  ;;  %v386_v47 = vld [vmem:[#allocation3] sm:$0xff] }
 0x369   : > { %v387_v48 = vmul.f32 %v1856_v7, %v386_v47 }
 0x36c   : > { %v644_v49 = vpop.f32.mrb[8].mxu1 }
 0x36d   : > { %v645_v50 = vadd.f32 %v644_v49, %v1799_v9  ;;  %v1158_v51 = vpop.f32.mrb[9].mxu1 }
 0x36e   : > { %v647_v52 = vpop.f32.mrb[10].mxu1  ;;  %v526_v51 = vld [vmem:[#allocation3 + $0x8] sm:$0xff] }
 0x36f   : > { %v1159_v53 = vpop.f32.mrb[11].mxu1  ;;  %v652_v54 = vsel %vm323_vm1, %v645_v50, -inf }
 0x370   : > { %653 = vmax.xlane.f32.xlu0 %v652_v54 }
 0x374   : > { %v783_v55 = vpop.f32.mrb[12].mxu1 }
 0x375   : > { %v1848_v56 = vadd.f32 %v783_v55, %v1799_v9  ;;  %v1170_v57 = vpop.f32.mrb[13].mxu1  ;;  %v668_v55 = vld [vmem:[#allocation3 + $0x10] sm:$0xff] }
 0x376   : > { %v786_v58 = vpop.f32.mrb[14].mxu1 }
 0x377   : > { %v1171_v59 = vpop.f32.mrb[15].mxu1  ;;  %v791_v60 = vsel %vm323_vm1, %v1848_v56, -inf }
 0x378   : > { %792 = vmax.xlane.f32.xlu1 %v791_v60  ;;  %v807_v60 = vld [vmem:[#allocation3 + $0x18] sm:$0xff] }
 0x3f5   : > { %v512_v63 = vpop.xlane.xlu1 %511 }
 0x3f6   : > { %v513_v1 = vmax.f32 %v509_v61, %v512_v63 }
 0x3f8   : > { %599 = vst.msk [vmem:[#allocation2 + $0x8] sm:$0xff] %vm300_vm2, %v513_v1  ;;  %519 = vperm.xlu1 %1264, %v513_v1   ;;  %v514_v12 = vsub.f32 %v509_v61, %v513_v1 }
 0x3fa   : > { %v515_v14 = vmul.f32 1.442695, %v514_v12 }
 0x3fc   : > { %544 = vrot.lane.b32.xlu1 %v1104_v2, %s1501_s23  ;;  %1271 = vpow2.f32 %v515_v14 }
 0x3fd   : > { %v654_v4 = vpop.xlane.xlu0 %653 }
 0x3fe   : > { %v655_v6 = vmax.f32 %v651_v3, %v654_v4 }
 0x400   : > { %738 = vst.msk [vmem:[#allocation2 + $0x10] sm:$0xff] %vm300_vm2, %v655_v6  ;;  %661 = vperm.xlu0 %1263, %v655_v6   ;;  %v656_v15 = vsub.f32 %v651_v3, %v655_v6 }
 0x402   : > { %v657_v16 = vmul.f32 1.442695, %v656_v15 }
 0x404   : > { %397 = vperm.xlu0 %1263, %v1856_v7   ;;  %1273 = vpow2.f32 %v657_v16 }
 0x405   : > { %v793_v9 = vpop.xlane.xlu1 %792 }
 0x406   : > { %v1862_v10 = vmax.f32 %v1858_v8, %v793_v9  ;;  %v1272_v17 = vpop.eup %1271 }
 0x408   : > { %v795_v11 = vsub.f32 %v1858_v8, %v1862_v10  ;;  %877 = vst.msk [vmem:[#allocation2 + $0x18] sm:$0xff] %vm300_vm2, %v1862_v10  ;;  %800 = vperm.xlu1 %1264, %v1862_v10  }
 0x40a   : > { %v796_v52 = vmul.f32 1.442695, %v795_v11 }
 0x40c   : > { %683 = vrot.lane.b32.xlu1 %v1104_v2, %s1502_s8 }
 0x40e   : > { %v1274_v18 = vpop.eup %1273 }
 0x410   : > { %822 = vrot.lane.b32.xlu1 %v1104_v2, %s1503_s19 }
 0x434   : > { %389 = vadd.xlane.f32.xlu1 %v388_v13 }
 0x445   : > { %536 = vperm.xlu1 %1264, %v1272_v17  }
 0x449   : > { %678 = vperm.xlu1 %1264, %v1274_v18  }
 0x477   : > { %v520_v19 = vpop.permute.xlu1 %519 }
 0x478   : > { %v522_v20 = vsub.f32 %v503_v44, %v520_v19 }
 0x47a   : > { %v523_v21 = vmul.f32 1.442695, %v522_v20 }
 0x47b   : > { %v545_v22 = vpop.permute.xlu1 %544 }
 0x47c   : > { %1275 = vpow2.f32 %v523_v21  ;;  %v550_v23 = vsel %vm405_vm4, %v545_v22, 0 }
 0x47d   : > { %1149 = vmatpush3.bf16.msra.mxu0 %v550_v23 }
 0x47e   : > { %1160 = vmatprep.subr.bf16.mxu0 %v1496_v0 }
 0x47f   : > { %v662_v24 = vpop.permute.xlu0 %661 }
 0x480   : > { %v664_v25 = vsub.f32 %v645_v50, %v662_v24 }
 0x482   : > { %v665_v27 = vmul.f32 1.442695, %v664_v25 }
 0x483   : > { %v398_v28 = vpop.permute.xlu0 %397 }
 0x484   : > { %1277 = vpow2.f32 %v665_v27  ;;  %v400_v29 = vmul.f32 %v398_v28, %v394_v26 }
 0x486   : > { %v1276_v30 = vpop.eup %1275  ;;  %v449_v31 = vadd.f32 %v1841_v39, %v400_v29 }
 0x487   : > { %v801_v32 = vpop.permute.xlu1 %800  ;;  %v528_v33 = vsel %vm323_vm1, %v1276_v30, 0.0  ;;  %v540_v34 = vpack.c.bf16 %v1276_v30, %v1276_v30 }
 0x488   : > { %450 = vst.msk [vmem:[#allocation4] sm:$0xff] %vm323_vm1, %v449_v31  ;;  %v803_v35 = vsub.f32 %v1848_v56, %v801_v32  ;;  %529 = vadd.xlane.f32.xlu0 %v528_v33  ;;  %v669_v56 = vmul.f32 %v1274_v18, %v668_v55 }
 0x489   : > { %1151 = vmatmul.mubr.msk.bf16.vlgmr.msra.gmra.mrb[4].mxu0 %vm323_vm1, %v540_v34 }
 0x48a   : > { %v804_v36 = vmul.f32 1.442695, %v803_v35  ;;  %1162 = vmatprep.mubr.msk.bf16.mxu0 %vm1497_vm0, %v1496_v0 }
 0x48b   : > { %v684_v37 = vpop.permute.xlu1 %683 }
 0x48c   : > { %1279 = vpow2.f32 %v804_v36  ;;  %v689_v38 = vsel %vm405_vm4, %v684_v37, 0 }
 0x48d   : > { %1161 = vmatpush3.bf16.msra.mxu0 %v689_v38  ;;  %1281 = vpow2.f32 %v796_v52 }
 0x48e   : > { %v1278_v39 = vpop.eup %1277  ;;  %1172 = vmatprep.subr.bf16.mxu0 %v1496_v0 }
 0x48f   : > { %v670_v40 = vsel %vm323_vm1, %v1278_v39, 0.0  ;;  %v682_v41 = vpack.c.bf16 %v1278_v39, %v1278_v39  ;;  %v823_v42 = vpop.permute.xlu1 %822  ;;  %v533_v23 = vld [vmem:[#allocation4] sm:$0xff] }
 0x490   : > { %671 = vadd.xlane.f32.xlu0 %v670_v40  ;;  %v828_v43 = vsel %vm405_vm4, %v823_v42, 0 }
 0x491   : > { %1163 = vmatmul.mubr.msk.bf16.vlgmr.msra.gmra.mrb[8].mxu0 %vm323_vm1, %v682_v41 }
 0x492   : > { %1173 = vmatpush3.bf16.msra.mxu0 %v828_v43  ;;  %1174 = vmatprep.mubr.msk.bf16.mxu0 %vm1497_vm0, %v1496_v0  ;;  %v527_v0 = vmul.f32 %v1272_v17, %v526_v51  ;;  %v931_v51 = vstv %s930_s29 }
 0x493   : > { %vm932_vm10 = vcmp.eq.s32.totalorder %v931_v51, 1 }
 0x496   : > { %v1280_v44 = vpop.eup %1279 }
 0x497   : > { %v809_v45 = vsel %vm323_vm1, %v1280_v44, 0.0  ;;  %v821_v46 = vpack.c.bf16 %v1280_v44, %v1280_v44  ;;  %v1282_v59 = vpop.eup %1281 }
 0x498   : > { %810 = vadd.xlane.f32.xlu0 %v809_v45  ;;  %v808_v61 = vmul.f32 %v1282_v59, %v807_v60 }
 0x499   : > { %1175 = vmatmul.mubr.msk.bf16.vlgmr.msra.gmra.mrb[12].mxu0 %vm323_vm1, %v821_v46 }
 0x4c1   : > { %v390_v49 = vpop.xlane.xlu1 %389 }
 0x4c2   : > { %v391_v50 = vadd.f32 %v390_v49, %v387_v48  ;;  %v924_v48 = vshrl.u32 %v316_v5, 7 }
 0x4c4   : > { %393 = vst.msk [vmem:[#allocation3] sm:$0xff] %vm300_vm2, %v391_v50  ;;  %v927_v50 = vstv %s881_s27 }
 0x4c5   : > { %v537_v22 = vpop.permute.xlu1 %536  ;;  %vm928_vm9 = vcmp.lt.s32.totalorder %v924_v48, %v927_v50 }
 0x4c6   : > { %v539_v24 = vmul.f32 %v537_v22, %v533_v23  ;;  %vm933_vm11 = vmand %vm928_vm9, %vm932_vm10 }
 0x4c9   : > { %v679_v27 = vpop.permute.xlu1 %678 }
 0x4cb   : > { %v883_v1 = vld [vmem:[#allocation3] sm:$0xff] }
 0x4cc   : > { %1283 = vrcp.f32 %v883_v1 }
 0x4d6   : > { %v1284_v8 = vpop.eup %1283 }
 0x515   : > { %v530_v53 = vpop.xlane.xlu0 %529 }
 0x516   : > { %v531_v54 = vadd.f32 %v530_v53, %v527_v0 }
 0x518   : > { %532 = vst.msk [vmem:[#allocation3 + $0x8] sm:$0xff] %vm300_vm2, %v531_v54 }
 0x51d   : > { %v672_v57 = vpop.xlane.xlu0 %671 }
 0x51e   : > { %v673_v58 = vadd.f32 %v672_v57, %v669_v56 }
 0x51f   : > { %v893_v9 = vld [vmem:[#allocation3 + $0x8] sm:$0xff] }
 0x520   : > { %674 = vst.msk [vmem:[#allocation3 + $0x10] sm:$0xff] %vm300_vm2, %v673_v58 }
 0x525   : > { %v811_v62 = vpop.xlane.xlu0 %810 }
 0x526   : > { %v812_v63 = vadd.f32 %v811_v62, %v808_v61 }
 0x527   : > { %v903_v2 = vld [vmem:[#allocation3 + $0x10] sm:$0xff] }
 0x528   : > { %813 = vst.msk [vmem:[#allocation3 + $0x18] sm:$0xff] %vm300_vm2, %v812_v63  ;;  %1285 = vrcp.f32 %v903_v2 }
 0x529   : > { %1287 = vrcp.f32 %v893_v9 }
 0x52f   : > { %v913_v15 = vld [vmem:[#allocation3 + $0x18] sm:$0xff] }
 0x530   : > { %1289 = vrcp.f32 %v913_v15 }
 0x532   : > { %v1286_v10 = vpop.eup %1285 }
 0x533   : > { %v1288_v20 = vpop.eup %1287 }
 0x53a   : > { %v1290_v21 = vpop.eup %1289 }
 0x55c   : > { %v586_v3 = vpop.f32.mrb[4].mxu0 }
 0x55d   : > { %v1152_v4 = vpop.f32.mrb[5].mxu0  ;;  %593 = vrot.lane.b32.xlu0 %v586_v3, %s1504_s7 }
 0x55e   : > { %v589_v6 = vpop.f32.mrb[6].mxu0 }
 0x55f   : > { %v1153_v7 = vpop.f32.mrb[7].mxu0 }
 0x561   : > { %887 = vperm.xlu0 %1263, %v1284_v8  }
 0x564   : > { %v725_v11 = vpop.f32.mrb[8].mxu0 }
 0x565   : > { %v1164_v12 = vpop.f32.mrb[9].mxu0  ;;  %732 = vrot.lane.b32.xlu1 %v725_v11, %s1505_s10  ;;  %907 = vperm.xlu0 %1263, %v1286_v10  }
 0x566   : > { %v728_v13 = vpop.f32.mrb[10].mxu0 }
 0x567   : > { %v1165_v14 = vpop.f32.mrb[11].mxu0 }
 0x569   : > { %817 = vperm.xlu1 %1264, %v1282_v59  }
 0x56c   : > { %v864_v16 = vpop.f32.mrb[12].mxu0 }
 0x56d   : > { %v1176_v17 = vpop.f32.mrb[13].mxu0  ;;  %871 = vrot.lane.b32.xlu1 %v864_v16, %s1506_s21 }
 0x56e   : > { %v867_v18 = vpop.f32.mrb[14].mxu0 }
 0x56f   : > { %v1177_v19 = vpop.f32.mrb[15].mxu0 }
 0x571   : > { %897 = vperm.xlu1 %1264, %v1288_v20  }
 0x575   : > { %917 = vperm.xlu1 %1264, %v1290_v21  }
 0x5cf   : > { %v594_v25 = vpop.permute.xlu0 %593 }
 0x5d0   : > { %v596_v26 = vadd.f32 %v594_v25, %v539_v24 }
 0x5d2   : > { %598 = vst.msk [vmem:[#allocation4] sm:$0xff] %vm597_vm6, %v596_v26 }
 0x5d7   : > { %v733_v30 = vpop.permute.xlu1 %732 }
 0x5d9   : > { %v675_v28 = vld [vmem:[#allocation4] sm:$0xff] }
 0x5da   : > { %v681_v29 = vmul.f32 %v679_v27, %v675_v28 }
 0x5dc   : > { %v735_v31 = vadd.f32 %v733_v30, %v681_v29 }
 0x5de   : > { %737 = vst.msk [vmem:[#allocation4] sm:$0xff] %vm736_vm7, %v735_v31 }
 0x5e0   : > { %v888_v37 = vpop.permute.xlu0 %887 }
 0x5e4   : > { %v908_v43 = vpop.permute.xlu0 %907 }
 0x5e5   : > { %v814_v33 = vld [vmem:[#allocation4] sm:$0xff] }
 0x5e8   : > { %v818_v32 = vpop.permute.xlu1 %817 }
 0x5e9   : > { %v820_v34 = vmul.f32 %v818_v32, %v814_v33 }
 0x5ec   : > { %v872_v35 = vpop.permute.xlu1 %871 }
 0x5ed   : > { %v874_v36 = vadd.f32 %v872_v35, %v820_v34 }
 0x5ef   : > { %876 = vst.msk [vmem:[#allocation4] sm:$0xff] %vm875_vm8, %v874_v36 }
 0x5f0   : > { %v898_v40 = vpop.permute.xlu1 %897 }
 0x5f4   : > { %v918_v46 = vpop.permute.xlu1 %917 }
 0x5f6   : > { %v882_v38 = vld [vmem:[#allocation4] sm:$0xff] }
 0x5f7   : > { %v890_v39 = vmul.f32 %v888_v37, %v882_v38 }
 0x5f9   : > { %891 = vst.msk [vmem:[#allocation4] sm:$0xff] %vm323_vm1, %v890_v39 }
 0x600   : > { %v892_v41 = vld [vmem:[#allocation4] sm:$0xff] }
 0x601   : > { %v900_v42 = vmul.f32 %v898_v40, %v892_v41 }
 0x603   : > { %901 = vst.msk [vmem:[#allocation4] sm:$0xff] %vm597_vm6, %v900_v42 }
 0x60a   : > { %v902_v44 = vld [vmem:[#allocation4] sm:$0xff] }
 0x60b   : > { %v910_v45 = vmul.f32 %v908_v43, %v902_v44 }
 0x60d   : > { %911 = vst.msk [vmem:[#allocation4] sm:$0xff] %vm736_vm7, %v910_v45 }
 0x614   : > { %v912_v47 = vld [vmem:[#allocation4] sm:$0xff] }
 0x615   : > { %v920_v49 = vmul.f32 %v918_v46, %v912_v47 }
 0x617   : > { %921 = vst.msk [vmem:[#allocation4] sm:$0xff] %vm875_vm8, %v920_v49 }
 0x61e   : > { %v934_v52 = vld [vmem:[#allocation4] sm:$0xff] }
 0x61f   : > { %v937_v0 = vsel %vm933_vm11, %v934_v52, 0.0 }
 0x620   : > { %v938_v53 = vpack.c.bf16 %v937_v0, %v937_v0 }
 0x622   : > { %940 = vst.msk [vmem:[%s294_s28] sm:$0xf] %vm939_vm12, %v938_v53 }
 0x623   : > { %1414 = shalt.err (!%p1411_p3)
}
 0x624   : > { %s1415_s20 = scalar_lea.hbm %s1914_s16, 64  ;;  %s1419_s8 = scalar_lea.hbm %s1967_s5, 128 }
 0x625   : > { %p1416_p8 = scmp.ne.s32.totalorder %s1914_s16, %s1415_s20  ;;  %p1420_p9 = scmp.lt.u32.totalorder %s1914_s16, %s1967_s5 }
 0x626   : > { %p1421_p6 = scmp.lt.u32.totalorder %s1419_s8, %s1415_s20  ;;  %p1423_p2 = scmp.lt.u32.totalorder %s1415_s20, %s1914_s16 }
 0x627   : > { %p1417_p11 = pnand %p1416_p8, %p1991_p4 }
 0x628   : > { %p1422_p10 = por %p1421_p6, %p1420_p9 }
 0x629   : > { %p1418_p13 = pneg %p1417_p11 }
 0x62a   : > { %p1424_p7 = por %p1423_p2, %p1422_p10 }
 0x62c   : > { %p1425_p0 = pnand %p1424_p7, %p1418_p13 }
 0x62e   : > { %1428 = shalt.err (!%p1425_p0)
}
 0x62f   : > { %1184 = dma.vmem_to_hbm [thread:$0]  (%p1991_p4), %s1916_s6, 64, %s1914_s16, %s942_s30  }
 0x630 PF: > { %s968_s7 = sand.u32 1, %s1469_s0   ;;  %p1992_p1 = scmp.ne.s32.totalorder %s1981_s26, 0 }
 0x631   : > { %p1993_p12 = scmp.ge.s32.totalorder %s1489_s1, 2  ;;  %s969_s10 = scalar_lea.sflag [#allocation10], %s968_s7 }
 0x633   : > { %p1197_p5 = pnand %p1993_p12, %p1992_p1 }
 0x635   : > { %1464 = dma.done.wait (!%p1197_p5), %s969_s10, 64  }
 0x636   : > { %1466 = vsyncadd (!%p1197_p5), %s969_s10, 4294967232  ;;  %s30_s1 = sadd.s32 1, %s1489_s1   ;;  %s1994_s24 = sld [smem:[#allocation21_spill]] }
 0x637   : > { %p27_p3 = scmp.ge.s32.totalorder %s30_s1, 4   ;;  %s1995_s15 = sld [smem:[#allocation19_spill]] }
 0x638   : > { %s1996_s16 = sld [smem:[#allocation20_spill]]  ;;  %s1997_s0 = smov %s1473_s13 }
 0x639   : > { %s1998_s13 = smov %s1477_s14  ;;  %29 = sbr.rel (!%p27_p3) target bundleno = 27 (0x1b), region = 115 }
 0x63c   : > { %s1999_s14 = smov %s1994_s24 }
 0x640   :  { %974 = vsyncpa [#allocation9], 1 }
 0x641   :  { %976 = vsyncpa [#allocation9 + $0x1], 1 }
 0x642   :  { %977 = vsyncpa [#allocation12], 1 }
 0x643   :  { %979 = vsyncpa [#allocation12 + $0x1], 1 }
 0x644   :  { %980 = vsyncpa [#allocation10], 1 }
 0x645   :  { %982 = vsyncpa [#allocation10 + $0x1], 1 }

</bundles_post_ra>
